<compile_context>
chip_gen: v6e
topology: v6e:2x2x1
jax: 0.10.0
libtpu: 0.0.40
codegen_flags: <defaults>
</compile_context>

<pallas_src>
import functools
import math

import numpy as np

import jax
import jax.numpy as jnp
from jax.experimental import pallas as pl
from jax.experimental.pallas import tpu as pltpu


# ----------------------------------------------------------------------------- kernel
def _fused_kernel(x_ref, m1_ref, m2_ref, m3_ref, *refs, H, W, K, last_layer):
    """Entire Conv2DownUp forward for one batch element, on (C, H*W) lane-dense slabs.

    x_ref  : (1, Cin, H*W)      input slab for this grid step (batch element)
    m*_ref : (1, H*W)           0/1 masks for valid-ring offsets r, 2r, 3r
    refs   : w1,b1, ..., w5,b5[, w6,b6], o_ref
             w_i : (Cout, K*K*Cin_i)  im2col weight matrix, BN scale folded in
             b_i : (Cout, 1)          folded BN bias
    o_ref  : (1, Cout, H*W)     output slab
    """
    o_ref = refs[-1]
    wb = refs[:-1]

    r = (K - 1) // 2
    HW = H * W
    pad = r * W + r                                   # max |flat tap shift|
    shifts = [dh * W + dw for dh in range(-r, r + 1) for dw in range(-r, r + 1)]

    def stage(xc, w_ref, b_ref, mask):
        """One (de)conv + folded-BN + ReLU stage on a (C, H*W) slab (centered frame)."""
        C = xc.shape[0]
        zeros = jnp.zeros((C, pad), jnp.float32)
        xp = jnp.concatenate([zeros, xc, zeros], axis=1)          # (C, HW + 2*pad)
        # im2col: K*K lane-shifted views of the frame, stacked along sublanes.
        patches = jnp.concatenate(
            [xp[:, pad + s: pad + s + HW] for s in shifts], axis=0)   # (K*K*C, HW)
        y = jnp.dot(w_ref[...], patches,
                    preferred_element_type=jnp.float32)           # MXU: (Cout, HW)
        y = jnp.maximum(y + b_ref[...], 0.0)                      # bias + ReLU
        return y * mask if mask is not None else y                # zero the invalid ring

    m1, m2, m3 = m1_ref[...], m2_ref[...], m3_ref[...]
    x = x_ref[0].astype(jnp.float32)                              # (Cin, HW)

    x1 = stage(x,  wb[0], wb[1], m1)          # c1         : valid offset r
    x2 = stage(x1, wb[2], wb[3], m2)          # c2         : offset 2r
    h = stage(x2, wb[4], wb[5], m3)           # cd3 conv   : offset 3r
    h = stage(h,  wb[6], wb[7], m2) + x2      # cd3 deconv : offset 2r, residual post-ReLU
    h = stage(h,  wb[8], wb[9], m1) + x1      # d4         : offset r,  residual post-ReLU
    if last_layer:
        h = stage(h, wb[10], wb[11], None)    # d5         : full frame
    o_ref[0] = h.astype(o_ref.dtype)


# ----------------------------------------------------------------------------- wrapper
def _frame_masks(H, W, r):
    """0/1 masks (as (1, H*W) f32) selecting the centered valid region at offsets r, 2r, 3r."""
    masks = []
    for off in (r, 2 * r, 3 * r):
        m = np.zeros((H, W), np.float32)
        m[off:H - off, off:W - off] = 1.0
        masks.append(jnp.asarray(m.reshape(1, H * W)))
    return masks


@functools.partial(jax.jit, static_argnames=("last_layer",))
def conv2_down_up(x, params, last_layer=True):
    N, Cin, H, W = x.shape
    w1 = params["c1"][0]
    Cout = w1.shape[0]
    K = int(math.isqrt(w1.shape[1] // Cin))
    assert K * K * Cin == w1.shape[1] and K % 2 == 1, "odd kernel_size required"
    r = (K - 1) // 2
    assert H >= 6 * r + 1 and W >= 6 * r + 1, "input too small for three VALID convs"
    HW = H * W

    x_slab = x.reshape(N, Cin, HW).astype(jnp.float32)
    masks = _frame_masks(H, W, r)

    names = ["c1", "c2", "cd3_conv", "cd3_deconv", "d4"] + (["d5"] if last_layer else [])
    wb = []
    for nm in names:
        wb.extend(params[nm])                 # (w_mat, bias) per stage

    kernel = functools.partial(_fused_kernel, H=H, W=W, K=K, last_layer=last_layer)

    in_specs = [pl.BlockSpec((1, Cin, HW), lambda n: (n, 0, 0))]
    in_specs += [pl.BlockSpec(a.shape, lambda n: (0, 0)) for a in (*masks, *wb)]

    out = pl.pallas_call(
        kernel,
        out_shape=jax.ShapeDtypeStruct((N, Cout, HW), jnp.float32),
        grid=(N,),
        in_specs=in_specs,
        out_specs=pl.BlockSpec((1, Cout, HW), lambda n: (n, 0, 0)),
        compiler_params=pltpu.CompilerParams(
            dimension_semantics=("parallel",)),   # v7x: both TensorCores split the batch
    )(x_slab, *masks, *wb)

    out = out.reshape(N, Cout, H, W)
    if not last_layer:
        out = out[:, :, r:H - r, r:W - r]      # crop frame to the true (H-2r, W-2r) map
    return out


# ----------------------------------------------------------------------------- params
def _bn_fold(gamma, beta, mean, var, eps=1e-5):
    scale = gamma / jnp.sqrt(var + eps)
    return scale, beta - mean * scale


def _prep_conv(w, scale, bias, transposed):
    """Precompute the im2col weight matrix (BN scale folded in) and the (Cout,1) bias.

    w has PyTorch layout: (Cout, Cin, K, K) for Conv2d, (Cin, Cout, K, K) for
    ConvTranspose2d.  The transposed conv (stride=1, pad=0) is rewritten once, here, as a
    VALID conv with channel-swapped, spatially-flipped weights.
    """
    if transposed:
        w = jnp.transpose(w, (1, 0, 2, 3))[:, :, ::-1, ::-1]
    Cout, Cin, K, _ = w.shape
    # w_mat[co, (kh*K + kw)*Cin + ci] = w[co, ci, kh, kw]  (matches in-kernel tap order)
    w_mat = jnp.transpose(w, (0, 2, 3, 1)).reshape(Cout, K * K * Cin)
    w_mat = w_mat * scale[:, None]                       # fold eval-mode BN scale
    return (w_mat.astype(jnp.float32), bias.reshape(Cout, 1).astype(jnp.float32))


def _make_layer(key, cin, cout, k, transposed=False):
    kw_, kg, kb, km, kv = jax.random.split(key, 5)
    w_shape = (cin, cout, k, k) if transposed else (cout, cin, k, k)
    w = 0.2 * jax.random.normal(kw_, w_shape, jnp.float32)
    gamma = 1.0 + 0.1 * jax.random.normal(kg, (cout,), jnp.float32)
    beta = 0.1 * jax.random.normal(kb, (cout,), jnp.float32)
    mean = 0.05 * jax.random.normal(km, (cout,), jnp.float32)
    var = 0.9 + 0.1 * jnp.abs(jax.random.normal(kv, (cout,), jnp.float32))
    scale, bn_bias = _bn_fold(gamma, beta, mean, var)
    return _prep_conv(w, scale, bn_bias, transposed)


def init_params(key, in_channels, out_channels, kernel_size=3):
    ks = jax.random.split(key, 6)
    return {
        "c1":         _make_layer(ks[0], in_channels,  out_channels, kernel_size, False),
        "c2":         _make_layer(ks[1], out_channels, out_channels, kernel_size, False),
        "cd3_conv":   _make_layer(ks[2], out_channels, out_channels, kernel_size, False),
        "cd3_deconv": _make_layer(ks[3], out_channels, out_channels, kernel_size, True),
        "d4":         _make_layer(ks[4], out_channels, out_channels, kernel_size, True),
        "d5":         _make_layer(ks[5], out_channels, out_channels, kernel_size, True),
    }


# ----------------------------------------------------------------------------- main
if __name__ == "__main__":
    key = jax.random.PRNGKey(0)
    kx, kp = jax.random.split(key)

    N, Cin, H, W = 2, 4, 16, 16
    Cout = 3
    x = jax.random.normal(kx, (N, Cin, H, W), jnp.float32)
    params = init_params(kp, Cin, Cout, kernel_size=3)

    out = conv2_down_up(x, params, last_layer=True)
    out = jax.block_until_ready(out)

    assert out.shape == (N, Cout, H, W), out.shape
    assert out.dtype == jnp.float32
    assert bool(jnp.all(jnp.isfinite(out)))
    print("KERNEL_OK")
</pallas_src>

<mosaic_0001>
module attributes {stable_mosaic.version = 11 : i64} {
  func.func @_fused_kernel(%arg0: i32, %arg1: memref<1x4x256xf32, #tpu.memory_space<vmem>>, %arg2: memref<1x256xf32, #tpu.memory_space<vmem>>, %arg3: memref<1x256xf32, #tpu.memory_space<vmem>>, %arg4: memref<1x256xf32, #tpu.memory_space<vmem>>, %arg5: memref<3x36xf32, #tpu.memory_space<vmem>>, %arg6: memref<3x1xf32, #tpu.memory_space<vmem>>, %arg7: memref<3x27xf32, #tpu.memory_space<vmem>>, %arg8: memref<3x1xf32, #tpu.memory_space<vmem>>, %arg9: memref<3x27xf32, #tpu.memory_space<vmem>>, %arg10: memref<3x1xf32, #tpu.memory_space<vmem>>, %arg11: memref<3x27xf32, #tpu.memory_space<vmem>>, %arg12: memref<3x1xf32, #tpu.memory_space<vmem>>, %arg13: memref<3x27xf32, #tpu.memory_space<vmem>>, %arg14: memref<3x1xf32, #tpu.memory_space<vmem>>, %arg15: memref<3x27xf32, #tpu.memory_space<vmem>>, %arg16: memref<3x1xf32, #tpu.memory_space<vmem>>, %arg17: memref<1x3x256xf32, #tpu.memory_space<vmem>>) attributes {dimension_semantics = [#tpu.dimension_semantics<parallel>], iteration_bounds = array<i64: 2>, scalar_prefetch = 0 : i64, scratch_operands = 0 : i64, tpu.core_type = #tpu.core_type<tc>, window_params = [{transform_indices = @transform_0, window_bounds = array<i64: 1, 4, 256>}, {pipeline_mode = #tpu.pipeline_mode<synchronous>, transform_indices = @transform_1, window_bounds = array<i64: 1, 256>}, {pipeline_mode = #tpu.pipeline_mode<synchronous>, transform_indices = @transform_2, window_bounds = array<i64: 1, 256>}, {pipeline_mode = #tpu.pipeline_mode<synchronous>, transform_indices = @transform_3, window_bounds = array<i64: 1, 256>}, {pipeline_mode = #tpu.pipeline_mode<synchronous>, transform_indices = @transform_4, window_bounds = array<i64: 3, 36>}, {pipeline_mode = #tpu.pipeline_mode<synchronous>, transform_indices = @transform_5, window_bounds = array<i64: 3, 1>}, {pipeline_mode = #tpu.pipeline_mode<synchronous>, transform_indices = @transform_6, window_bounds = array<i64: 3, 27>}, {pipeline_mode = #tpu.pipeline_mode<synchronous>, transform_indices = @transform_7, window_bounds = array<i64: 3, 1>}, {pipeline_mode = #tpu.pipeline_mode<synchronous>, transform_indices = @transform_8, window_bounds = array<i64: 3, 27>}, {pipeline_mode = #tpu.pipeline_mode<synchronous>, transform_indices = @transform_9, window_bounds = array<i64: 3, 1>}, {pipeline_mode = #tpu.pipeline_mode<synchronous>, transform_indices = @transform_10, window_bounds = array<i64: 3, 27>}, {pipeline_mode = #tpu.pipeline_mode<synchronous>, transform_indices = @transform_11, window_bounds = array<i64: 3, 1>}, {pipeline_mode = #tpu.pipeline_mode<synchronous>, transform_indices = @transform_12, window_bounds = array<i64: 3, 27>}, {pipeline_mode = #tpu.pipeline_mode<synchronous>, transform_indices = @transform_13, window_bounds = array<i64: 3, 1>}, {pipeline_mode = #tpu.pipeline_mode<synchronous>, transform_indices = @transform_14, window_bounds = array<i64: 3, 27>}, {pipeline_mode = #tpu.pipeline_mode<synchronous>, transform_indices = @transform_15, window_bounds = array<i64: 3, 1>}, {transform_indices = @transform_16, window_bounds = array<i64: 1, 3, 256>}]} {
    %c0 = arith.constant 0 : index
    %c0_0 = arith.constant 0 : index
    %0 = vector.load %arg2[%c0, %c0_0] : memref<1x256xf32, #tpu.memory_space<vmem>>, vector<1x256xf32>
    %c0_1 = arith.constant 0 : index
    %c0_2 = arith.constant 0 : index
    %1 = vector.load %arg3[%c0_1, %c0_2] : memref<1x256xf32, #tpu.memory_space<vmem>>, vector<1x256xf32>
    %c0_3 = arith.constant 0 : index
    %c0_4 = arith.constant 0 : index
    %2 = vector.load %arg4[%c0_3, %c0_4] : memref<1x256xf32, #tpu.memory_space<vmem>>, vector<1x256xf32>
    %c0_5 = arith.constant 0 : index
    %c0_6 = arith.constant 0 : index
    %c0_7 = arith.constant 0 : index
    %3 = vector.load %arg1[%c0_5, %c0_6, %c0_7] : memref<1x4x256xf32, #tpu.memory_space<vmem>>, vector<1x4x256xf32>
    %4 = vector.shape_cast %3 : vector<1x4x256xf32> to vector<4x256xf32>
    %cst = arith.constant 0.000000e+00 : f32
    %5 = vector.broadcast %cst : f32 to vector<4x17xf32>
    %6 = tpu.concatenate %5, %4, %5 in 1 : vector<4x17xf32>, vector<4x256xf32>, vector<4x17xf32> -> vector<4x290xf32>
    %7 = vector.extract_strided_slice %6 {offsets = [0, 0], sizes = [4, 256], strides = [1, 1]} : vector<4x290xf32> to vector<4x256xf32>
    %8 = vector.extract_strided_slice %6 {offsets = [0, 1], sizes = [4, 256], strides = [1, 1]} : vector<4x290xf32> to vector<4x256xf32>
    %9 = vector.extract_strided_slice %6 {offsets = [0, 2], sizes = [4, 256], strides = [1, 1]} : vector<4x290xf32> to vector<4x256xf32>
    %10 = vector.extract_strided_slice %6 {offsets = [0, 16], sizes = [4, 256], strides = [1, 1]} : vector<4x290xf32> to vector<4x256xf32>
    %11 = vector.extract_strided_slice %6 {offsets = [0, 17], sizes = [4, 256], strides = [1, 1]} : vector<4x290xf32> to vector<4x256xf32>
    %12 = vector.extract_strided_slice %6 {offsets = [0, 18], sizes = [4, 256], strides = [1, 1]} : vector<4x290xf32> to vector<4x256xf32>
    %13 = vector.extract_strided_slice %6 {offsets = [0, 32], sizes = [4, 256], strides = [1, 1]} : vector<4x290xf32> to vector<4x256xf32>
    %14 = vector.extract_strided_slice %6 {offsets = [0, 33], sizes = [4, 256], strides = [1, 1]} : vector<4x290xf32> to vector<4x256xf32>
    %15 = vector.extract_strided_slice %6 {offsets = [0, 34], sizes = [4, 256], strides = [1, 1]} : vector<4x290xf32> to vector<4x256xf32>
    %16 = tpu.concatenate %7, %8, %9, %10, %11, %12, %13, %14, %15 in 0 : vector<4x256xf32>, vector<4x256xf32>, vector<4x256xf32>, vector<4x256xf32>, vector<4x256xf32>, vector<4x256xf32>, vector<4x256xf32>, vector<4x256xf32>, vector<4x256xf32> -> vector<36x256xf32>
    %c0_8 = arith.constant 0 : index
    %c0_9 = arith.constant 0 : index
    %17 = vector.load %arg5[%c0_8, %c0_9] : memref<3x36xf32, #tpu.memory_space<vmem>>, vector<3x36xf32>
    %cst_10 = arith.constant dense<0.000000e+00> : vector<3x256xf32>
    %18 = tpu.matmul %17, %16, %cst_10 {dimension_numbers = #tpu.dot_dimension_numbers<[1], [0], [0], [1], [0, 0, 1, 1], [], []>} : vector<3x36xf32>, vector<36x256xf32>, vector<3x256xf32> -> vector<3x256xf32>
    %c0_11 = arith.constant 0 : index
    %c0_12 = arith.constant 0 : index
    %19 = vector.load %arg6[%c0_11, %c0_12] : memref<3x1xf32, #tpu.memory_space<vmem>>, vector<3x1xf32>
    %20 = vector.broadcast %19 : vector<3x1xf32> to vector<3x256xf32>
    %21 = arith.addf %18, %20 : vector<3x256xf32>
    %cst_13 = arith.constant 0.000000e+00 : f32
    %22 = vector.broadcast %cst_13 : f32 to vector<3x256xf32>
    %23 = arith.maximumf %21, %22 : vector<3x256xf32>
    %24 = vector.broadcast %0 : vector<1x256xf32> to vector<3x256xf32>
    %25 = arith.mulf %23, %24 : vector<3x256xf32>
    %cst_14 = arith.constant 0.000000e+00 : f32
    %26 = vector.broadcast %cst_14 : f32 to vector<3x17xf32>
    %27 = tpu.concatenate %26, %25, %26 in 1 : vector<3x17xf32>, vector<3x256xf32>, vector<3x17xf32> -> vector<3x290xf32>
    %28 = vector.extract_strided_slice %27 {offsets = [0, 0], sizes = [3, 256], strides = [1, 1]} : vector<3x290xf32> to vector<3x256xf32>
    %29 = vector.extract_strided_slice %27 {offsets = [0, 1], sizes = [3, 256], strides = [1, 1]} : vector<3x290xf32> to vector<3x256xf32>
    %30 = vector.extract_strided_slice %27 {offsets = [0, 2], sizes = [3, 256], strides = [1, 1]} : vector<3x290xf32> to vector<3x256xf32>
    %31 = vector.extract_strided_slice %27 {offsets = [0, 16], sizes = [3, 256], strides = [1, 1]} : vector<3x290xf32> to vector<3x256xf32>
    %32 = vector.extract_strided_slice %27 {offsets = [0, 17], sizes = [3, 256], strides = [1, 1]} : vector<3x290xf32> to vector<3x256xf32>
    %33 = vector.extract_strided_slice %27 {offsets = [0, 18], sizes = [3, 256], strides = [1, 1]} : vector<3x290xf32> to vector<3x256xf32>
    %34 = vector.extract_strided_slice %27 {offsets = [0, 32], sizes = [3, 256], strides = [1, 1]} : vector<3x290xf32> to vector<3x256xf32>
    %35 = vector.extract_strided_slice %27 {offsets = [0, 33], sizes = [3, 256], strides = [1, 1]} : vector<3x290xf32> to vector<3x256xf32>
    %36 = vector.extract_strided_slice %27 {offsets = [0, 34], sizes = [3, 256], strides = [1, 1]} : vector<3x290xf32> to vector<3x256xf32>
    %37 = tpu.concatenate %28, %29, %30, %31, %32, %33, %34, %35, %36 in 0 : vector<3x256xf32>, vector<3x256xf32>, vector<3x256xf32>, vector<3x256xf32>, vector<3x256xf32>, vector<3x256xf32>, vector<3x256xf32>, vector<3x256xf32>, vector<3x256xf32> -> vector<27x256xf32>
    %c0_15 = arith.constant 0 : index
    %c0_16 = arith.constant 0 : index
    %38 = vector.load %arg7[%c0_15, %c0_16] : memref<3x27xf32, #tpu.memory_space<vmem>>, vector<3x27xf32>
    %cst_17 = arith.constant dense<0.000000e+00> : vector<3x256xf32>
    %39 = tpu.matmul %38, %37, %cst_17 {dimension_numbers = #tpu.dot_dimension_numbers<[1], [0], [0], [1], [0, 0, 1, 1], [], []>} : vector<3x27xf32>, vector<27x256xf32>, vector<3x256xf32> -> vector<3x256xf32>
    %c0_18 = arith.constant 0 : index
    %c0_19 = arith.constant 0 : index
    %40 = vector.load %arg8[%c0_18, %c0_19] : memref<3x1xf32, #tpu.memory_space<vmem>>, vector<3x1xf32>
    %41 = vector.broadcast %40 : vector<3x1xf32> to vector<3x256xf32>
    %42 = arith.addf %39, %41 : vector<3x256xf32>
    %cst_20 = arith.constant 0.000000e+00 : f32
    %43 = vector.broadcast %cst_20 : f32 to vector<3x256xf32>
    %44 = arith.maximumf %42, %43 : vector<3x256xf32>
    %45 = vector.broadcast %1 : vector<1x256xf32> to vector<3x256xf32>
    %46 = arith.mulf %44, %45 : vector<3x256xf32>
    %cst_21 = arith.constant 0.000000e+00 : f32
    %47 = vector.broadcast %cst_21 : f32 to vector<3x17xf32>
    %48 = tpu.concatenate %47, %46, %47 in 1 : vector<3x17xf32>, vector<3x256xf32>, vector<3x17xf32> -> vector<3x290xf32>
    %49 = vector.extract_strided_slice %48 {offsets = [0, 0], sizes = [3, 256], strides = [1, 1]} : vector<3x290xf32> to vector<3x256xf32>
    %50 = vector.extract_strided_slice %48 {offsets = [0, 1], sizes = [3, 256], strides = [1, 1]} : vector<3x290xf32> to vector<3x256xf32>
    %51 = vector.extract_strided_slice %48 {offsets = [0, 2], sizes = [3, 256], strides = [1, 1]} : vector<3x290xf32> to vector<3x256xf32>
    %52 = vector.extract_strided_slice %48 {offsets = [0, 16], sizes = [3, 256], strides = [1, 1]} : vector<3x290xf32> to vector<3x256xf32>
    %53 = vector.extract_strided_slice %48 {offsets = [0, 17], sizes = [3, 256], strides = [1, 1]} : vector<3x290xf32> to vector<3x256xf32>
    %54 = vector.extract_strided_slice %48 {offsets = [0, 18], sizes = [3, 256], strides = [1, 1]} : vector<3x290xf32> to vector<3x256xf32>
    %55 = vector.extract_strided_slice %48 {offsets = [0, 32], sizes = [3, 256], strides = [1, 1]} : vector<3x290xf32> to vector<3x256xf32>
    %56 = vector.extract_strided_slice %48 {offsets = [0, 33], sizes = [3, 256], strides = [1, 1]} : vector<3x290xf32> to vector<3x256xf32>
    %57 = vector.extract_strided_slice %48 {offsets = [0, 34], sizes = [3, 256], strides = [1, 1]} : vector<3x290xf32> to vector<3x256xf32>
    %58 = tpu.concatenate %49, %50, %51, %52, %53, %54, %55, %56, %57 in 0 : vector<3x256xf32>, vector<3x256xf32>, vector<3x256xf32>, vector<3x256xf32>, vector<3x256xf32>, vector<3x256xf32>, vector<3x256xf32>, vector<3x256xf32>, vector<3x256xf32> -> vector<27x256xf32>
    %c0_22 = arith.constant 0 : index
    %c0_23 = arith.constant 0 : index
    %59 = vector.load %arg9[%c0_22, %c0_23] : memref<3x27xf32, #tpu.memory_space<vmem>>, vector<3x27xf32>
    %cst_24 = arith.constant dense<0.000000e+00> : vector<3x256xf32>
    %60 = tpu.matmul %59, %58, %cst_24 {dimension_numbers = #tpu.dot_dimension_numbers<[1], [0], [0], [1], [0, 0, 1, 1], [], []>} : vector<3x27xf32>, vector<27x256xf32>, vector<3x256xf32> -> vector<3x256xf32>
    %c0_25 = arith.constant 0 : index
    %c0_26 = arith.constant 0 : index
    %61 = vector.load %arg10[%c0_25, %c0_26] : memref<3x1xf32, #tpu.memory_space<vmem>>, vector<3x1xf32>
    %62 = vector.broadcast %61 : vector<3x1xf32> to vector<3x256xf32>
    %63 = arith.addf %60, %62 : vector<3x256xf32>
    %cst_27 = arith.constant 0.000000e+00 : f32
    %64 = vector.broadcast %cst_27 : f32 to vector<3x256xf32>
    %65 = arith.maximumf %63, %64 : vector<3x256xf32>
    %66 = vector.broadcast %2 : vector<1x256xf32> to vector<3x256xf32>
    %67 = arith.mulf %65, %66 : vector<3x256xf32>
    %cst_28 = arith.constant 0.000000e+00 : f32
    %68 = vector.broadcast %cst_28 : f32 to vector<3x17xf32>
    %69 = tpu.concatenate %68, %67, %68 in 1 : vector<3x17xf32>, vector<3x256xf32>, vector<3x17xf32> -> vector<3x290xf32>
    %70 = vector.extract_strided_slice %69 {offsets = [0, 0], sizes = [3, 256], strides = [1, 1]} : vector<3x290xf32> to vector<3x256xf32>
    %71 = vector.extract_strided_slice %69 {offsets = [0, 1], sizes = [3, 256], strides = [1, 1]} : vector<3x290xf32> to vector<3x256xf32>
    %72 = vector.extract_strided_slice %69 {offsets = [0, 2], sizes = [3, 256], strides = [1, 1]} : vector<3x290xf32> to vector<3x256xf32>
    %73 = vector.extract_strided_slice %69 {offsets = [0, 16], sizes = [3, 256], strides = [1, 1]} : vector<3x290xf32> to vector<3x256xf32>
    %74 = vector.extract_strided_slice %69 {offsets = [0, 17], sizes = [3, 256], strides = [1, 1]} : vector<3x290xf32> to vector<3x256xf32>
    %75 = vector.extract_strided_slice %69 {offsets = [0, 18], sizes = [3, 256], strides = [1, 1]} : vector<3x290xf32> to vector<3x256xf32>
    %76 = vector.extract_strided_slice %69 {offsets = [0, 32], sizes = [3, 256], strides = [1, 1]} : vector<3x290xf32> to vector<3x256xf32>
    %77 = vector.extract_strided_slice %69 {offsets = [0, 33], sizes = [3, 256], strides = [1, 1]} : vector<3x290xf32> to vector<3x256xf32>
    %78 = vector.extract_strided_slice %69 {offsets = [0, 34], sizes = [3, 256], strides = [1, 1]} : vector<3x290xf32> to vector<3x256xf32>
    %79 = tpu.concatenate %70, %71, %72, %73, %74, %75, %76, %77, %78 in 0 : vector<3x256xf32>, vector<3x256xf32>, vector<3x256xf32>, vector<3x256xf32>, vector<3x256xf32>, vector<3x256xf32>, vector<3x256xf32>, vector<3x256xf32>, vector<3x256xf32> -> vector<27x256xf32>
    %c0_29 = arith.constant 0 : index
    %c0_30 = arith.constant 0 : index
    %80 = vector.load %arg11[%c0_29, %c0_30] : memref<3x27xf32, #tpu.memory_space<vmem>>, vector<3x27xf32>
    %cst_31 = arith.constant dense<0.000000e+00> : vector<3x256xf32>
    %81 = tpu.matmul %80, %79, %cst_31 {dimension_numbers = #tpu.dot_dimension_numbers<[1], [0], [0], [1], [0, 0, 1, 1], [], []>} : vector<3x27xf32>, vector<27x256xf32>, vector<3x256xf32> -> vector<3x256xf32>
    %c0_32 = arith.constant 0 : index
    %c0_33 = arith.constant 0 : index
    %82 = vector.load %arg12[%c0_32, %c0_33] : memref<3x1xf32, #tpu.memory_space<vmem>>, vector<3x1xf32>
    %83 = vector.broadcast %82 : vector<3x1xf32> to vector<3x256xf32>
    %84 = arith.addf %81, %83 : vector<3x256xf32>
    %cst_34 = arith.constant 0.000000e+00 : f32
    %85 = vector.broadcast %cst_34 : f32 to vector<3x256xf32>
    %86 = arith.maximumf %84, %85 : vector<3x256xf32>
    %87 = vector.broadcast %1 : vector<1x256xf32> to vector<3x256xf32>
    %88 = arith.mulf %86, %87 : vector<3x256xf32>
    %89 = arith.addf %88, %46 : vector<3x256xf32>
    %cst_35 = arith.constant 0.000000e+00 : f32
    %90 = vector.broadcast %cst_35 : f32 to vector<3x17xf32>
    %91 = tpu.concatenate %90, %89, %90 in 1 : vector<3x17xf32>, vector<3x256xf32>, vector<3x17xf32> -> vector<3x290xf32>
    %92 = vector.extract_strided_slice %91 {offsets = [0, 0], sizes = [3, 256], strides = [1, 1]} : vector<3x290xf32> to vector<3x256xf32>
    %93 = vector.extract_strided_slice %91 {offsets = [0, 1], sizes = [3, 256], strides = [1, 1]} : vector<3x290xf32> to vector<3x256xf32>
    %94 = vector.extract_strided_slice %91 {offsets = [0, 2], sizes = [3, 256], strides = [1, 1]} : vector<3x290xf32> to vector<3x256xf32>
    %95 = vector.extract_strided_slice %91 {offsets = [0, 16], sizes = [3, 256], strides = [1, 1]} : vector<3x290xf32> to vector<3x256xf32>
    %96 = vector.extract_strided_slice %91 {offsets = [0, 17], sizes = [3, 256], strides = [1, 1]} : vector<3x290xf32> to vector<3x256xf32>
    %97 = vector.extract_strided_slice %91 {offsets = [0, 18], sizes = [3, 256], strides = [1, 1]} : vector<3x290xf32> to vector<3x256xf32>
    %98 = vector.extract_strided_slice %91 {offsets = [0, 32], sizes = [3, 256], strides = [1, 1]} : vector<3x290xf32> to vector<3x256xf32>
    %99 = vector.extract_strided_slice %91 {offsets = [0, 33], sizes = [3, 256], strides = [1, 1]} : vector<3x290xf32> to vector<3x256xf32>
    %100 = vector.extract_strided_slice %91 {offsets = [0, 34], sizes = [3, 256], strides = [1, 1]} : vector<3x290xf32> to vector<3x256xf32>
    %101 = tpu.concatenate %92, %93, %94, %95, %96, %97, %98, %99, %100 in 0 : vector<3x256xf32>, vector<3x256xf32>, vector<3x256xf32>, vector<3x256xf32>, vector<3x256xf32>, vector<3x256xf32>, vector<3x256xf32>, vector<3x256xf32>, vector<3x256xf32> -> vector<27x256xf32>
    %c0_36 = arith.constant 0 : index
    %c0_37 = arith.constant 0 : index
    %102 = vector.load %arg13[%c0_36, %c0_37] : memref<3x27xf32, #tpu.memory_space<vmem>>, vector<3x27xf32>
    %cst_38 = arith.constant dense<0.000000e+00> : vector<3x256xf32>
    %103 = tpu.matmul %102, %101, %cst_38 {dimension_numbers = #tpu.dot_dimension_numbers<[1], [0], [0], [1], [0, 0, 1, 1], [], []>} : vector<3x27xf32>, vector<27x256xf32>, vector<3x256xf32> -> vector<3x256xf32>
    %c0_39 = arith.constant 0 : index
    %c0_40 = arith.constant 0 : index
    %104 = vector.load %arg14[%c0_39, %c0_40] : memref<3x1xf32, #tpu.memory_space<vmem>>, vector<3x1xf32>
    %105 = vector.broadcast %104 : vector<3x1xf32> to vector<3x256xf32>
    %106 = arith.addf %103, %105 : vector<3x256xf32>
    %cst_41 = arith.constant 0.000000e+00 : f32
    %107 = vector.broadcast %cst_41 : f32 to vector<3x256xf32>
    %108 = arith.maximumf %106, %107 : vector<3x256xf32>
    %109 = vector.broadcast %0 : vector<1x256xf32> to vector<3x256xf32>
    %110 = arith.mulf %108, %109 : vector<3x256xf32>
    %111 = arith.addf %110, %25 : vector<3x256xf32>
    %cst_42 = arith.constant 0.000000e+00 : f32
    %112 = vector.broadcast %cst_42 : f32 to vector<3x17xf32>
    %113 = tpu.concatenate %112, %111, %112 in 1 : vector<3x17xf32>, vector<3x256xf32>, vector<3x17xf32> -> vector<3x290xf32>
    %114 = vector.extract_strided_slice %113 {offsets = [0, 0], sizes = [3, 256], strides = [1, 1]} : vector<3x290xf32> to vector<3x256xf32>
    %115 = vector.extract_strided_slice %113 {offsets = [0, 1], sizes = [3, 256], strides = [1, 1]} : vector<3x290xf32> to vector<3x256xf32>
    %116 = vector.extract_strided_slice %113 {offsets = [0, 2], sizes = [3, 256], strides = [1, 1]} : vector<3x290xf32> to vector<3x256xf32>
    %117 = vector.extract_strided_slice %113 {offsets = [0, 16], sizes = [3, 256], strides = [1, 1]} : vector<3x290xf32> to vector<3x256xf32>
    %118 = vector.extract_strided_slice %113 {offsets = [0, 17], sizes = [3, 256], strides = [1, 1]} : vector<3x290xf32> to vector<3x256xf32>
    %119 = vector.extract_strided_slice %113 {offsets = [0, 18], sizes = [3, 256], strides = [1, 1]} : vector<3x290xf32> to vector<3x256xf32>
    %120 = vector.extract_strided_slice %113 {offsets = [0, 32], sizes = [3, 256], strides = [1, 1]} : vector<3x290xf32> to vector<3x256xf32>
    %121 = vector.extract_strided_slice %113 {offsets = [0, 33], sizes = [3, 256], strides = [1, 1]} : vector<3x290xf32> to vector<3x256xf32>
    %122 = vector.extract_strided_slice %113 {offsets = [0, 34], sizes = [3, 256], strides = [1, 1]} : vector<3x290xf32> to vector<3x256xf32>
    %123 = tpu.concatenate %114, %115, %116, %117, %118, %119, %120, %121, %122 in 0 : vector<3x256xf32>, vector<3x256xf32>, vector<3x256xf32>, vector<3x256xf32>, vector<3x256xf32>, vector<3x256xf32>, vector<3x256xf32>, vector<3x256xf32>, vector<3x256xf32> -> vector<27x256xf32>
    %c0_43 = arith.constant 0 : index
    %c0_44 = arith.constant 0 : index
    %124 = vector.load %arg15[%c0_43, %c0_44] : memref<3x27xf32, #tpu.memory_space<vmem>>, vector<3x27xf32>
    %cst_45 = arith.constant dense<0.000000e+00> : vector<3x256xf32>
    %125 = tpu.matmul %124, %123, %cst_45 {dimension_numbers = #tpu.dot_dimension_numbers<[1], [0], [0], [1], [0, 0, 1, 1], [], []>} : vector<3x27xf32>, vector<27x256xf32>, vector<3x256xf32> -> vector<3x256xf32>
    %c0_46 = arith.constant 0 : index
    %c0_47 = arith.constant 0 : index
    %126 = vector.load %arg16[%c0_46, %c0_47] : memref<3x1xf32, #tpu.memory_space<vmem>>, vector<3x1xf32>
    %127 = vector.broadcast %126 : vector<3x1xf32> to vector<3x256xf32>
    %128 = arith.addf %125, %127 : vector<3x256xf32>
    %cst_48 = arith.constant 0.000000e+00 : f32
    %129 = vector.broadcast %cst_48 : f32 to vector<3x256xf32>
    %130 = arith.maximumf %128, %129 : vector<3x256xf32>
    %c0_49 = arith.constant 0 : index
    %c0_50 = arith.constant 0 : index
    %c0_51 = arith.constant 0 : index
    %131 = vector.load %arg17[%c0_49, %c0_50, %c0_51] : memref<1x3x256xf32, #tpu.memory_space<vmem>>, vector<1x3x256xf32>
    %132 = vector.shape_cast %131 : vector<1x3x256xf32> to vector<3x256xf32>
    %133 = vector.shape_cast %130 : vector<3x256xf32> to vector<1x3x256xf32>
    tpu.vector_store %arg17[%c0_49, %c0_50, %c0_51], %133 {strides = array<i32>} : memref<1x3x256xf32, #tpu.memory_space<vmem>>, vector<1x3x256xf32>,
    return
  }
  func.func @transform_0(%arg0: i32) -> (i32, i32, i32) {
    %c0_i32 = arith.constant 0 : i32
    %c0_i32_0 = arith.constant 0 : i32
    %c0_i32_1 = arith.constant 0 : i32
    return %arg0, %c0_i32, %c0_i32_0 : i32, i32, i32
  }
  func.func @transform_1(%arg0: i32) -> (i32, i32) {
    %c0_i32 = arith.constant 0 : i32
    %c0_i32_0 = arith.constant 0 : i32
    %c0_i32_1 = arith.constant 0 : i32
    return %c0_i32, %c0_i32_0 : i32, i32
  }
  func.func @transform_2(%arg0: i32) -> (i32, i32) {
    %c0_i32 = arith.constant 0 : i32
    %c0_i32_0 = arith.constant 0 : i32
    %c0_i32_1 = arith.constant 0 : i32
    return %c0_i32, %c0_i32_0 : i32, i32
  }
  func.func @transform_3(%arg0: i32) -> (i32, i32) {
    %c0_i32 = arith.constant 0 : i32
    %c0_i32_0 = arith.constant 0 : i32
    %c0_i32_1 = arith.constant 0 : i32
    return %c0_i32, %c0_i32_0 : i32, i32
  }
  func.func @transform_4(%arg0: i32) -> (i32, i32) {
    %c0_i32 = arith.constant 0 : i32
    %c0_i32_0 = arith.constant 0 : i32
    %c0_i32_1 = arith.constant 0 : i32
    return %c0_i32, %c0_i32_0 : i32, i32
  }
  func.func @transform_5(%arg0: i32) -> (i32, i32) {
    %c0_i32 = arith.constant 0 : i32
    %c0_i32_0 = arith.constant 0 : i32
    %c0_i32_1 = arith.constant 0 : i32
    return %c0_i32, %c0_i32_0 : i32, i32
  }
  func.func @transform_6(%arg0: i32) -> (i32, i32) {
    %c0_i32 = arith.constant 0 : i32
    %c0_i32_0 = arith.constant 0 : i32
    %c0_i32_1 = arith.constant 0 : i32
    return %c0_i32, %c0_i32_0 : i32, i32
  }
  func.func @transform_7(%arg0: i32) -> (i32, i32) {
    %c0_i32 = arith.constant 0 : i32
    %c0_i32_0 = arith.constant 0 : i32
    %c0_i32_1 = arith.constant 0 : i32
    return %c0_i32, %c0_i32_0 : i32, i32
  }
  func.func @transform_8(%arg0: i32) -> (i32, i32) {
    %c0_i32 = arith.constant 0 : i32
    %c0_i32_0 = arith.constant 0 : i32
    %c0_i32_1 = arith.constant 0 : i32
    return %c0_i32, %c0_i32_0 : i32, i32
  }
  func.func @transform_9(%arg0: i32) -> (i32, i32) {
    %c0_i32 = arith.constant 0 : i32
    %c0_i32_0 = arith.constant 0 : i32
    %c0_i32_1 = arith.constant 0 : i32
    return %c0_i32, %c0_i32_0 : i32, i32
  }
  func.func @transform_10(%arg0: i32) -> (i32, i32) {
    %c0_i32 = arith.constant 0 : i32
    %c0_i32_0 = arith.constant 0 : i32
    %c0_i32_1 = arith.constant 0 : i32
    return %c0_i32, %c0_i32_0 : i32, i32
  }
  func.func @transform_11(%arg0: i32) -> (i32, i32) {
    %c0_i32 = arith.constant 0 : i32
    %c0_i32_0 = arith.constant 0 : i32
    %c0_i32_1 = arith.constant 0 : i32
    return %c0_i32, %c0_i32_0 : i32, i32
  }
  func.func @transform_12(%arg0: i32) -> (i32, i32) {
    %c0_i32 = arith.constant 0 : i32
    %c0_i32_0 = arith.constant 0 : i32
    %c0_i32_1 = arith.constant 0 : i32
    return %c0_i32, %c0_i32_0 : i32, i32
  }
  func.func @transform_13(%arg0: i32) -> (i32, i32) {
    %c0_i32 = arith.constant 0 : i32
    %c0_i32_0 = arith.constant 0 : i32
    %c0_i32_1 = arith.constant 0 : i32
    return %c0_i32, %c0_i32_0 : i32, i32
  }
  func.func @transform_14(%arg0: i32) -> (i32, i32) {
    %c0_i32 = arith.constant 0 : i32
    %c0_i32_0 = arith.constant 0 : i32
    %c0_i32_1 = arith.constant 0 : i32
    return %c0_i32, %c0_i32_0 : i32, i32
  }
  func.func @transform_15(%arg0: i32) -> (i32, i32) {
    %c0_i32 = arith.constant 0 : i32
    %c0_i32_0 = arith.constant 0 : i32
    %c0_i32_1 = arith.constant 0 : i32
    return %c0_i32, %c0_i32_0 : i32, i32
  }
  func.func @transform_16(%arg0: i32) -> (i32, i32, i32) {
    %c0_i32 = arith.constant 0 : i32
    %c0_i32_0 = arith.constant 0 : i32
    %c0_i32_1 = arith.constant 0 : i32
    return %arg0, %c0_i32, %c0_i32_0 : i32, i32, i32
  }
}

</mosaic_0001>

<bundles_post_ra>
// kernel: conv2_down_up.1
= control target key start
LH: loop header
LB: loop body
LE: loop exit
PB: predicated region body
PF: predicated region fallthrough
CT: control target
= control target key end

     0   :  { %s2068_s21 = smov 0   ;;  %s2676_s0 = inlined_call_operand.vmem [shape: f32[2,4,256], index: 0, kind: input, shape index: {}]   ;;  %s2677_s1 = inlined_call_operand.vmem [shape: f32[1,256], index: 1, kind: input, shape index: {}]   ;;  %s2678_s2 = inlined_call_operand.vmem [shape: f32[1,256], index: 2, kind: input, shape index: {}]   ;;  %s2679_s3 = inlined_call_operand.vmem [shape: f32[1,256], index: 3, kind: input, shape index: {}]   ;;  %s2680_s4 = inlined_call_operand.vmem [shape: f32[3,36], index: 4, kind: input, shape index: {}]   ;;  %s2681_s5 = inlined_call_operand.vmem [shape: f32[3,1], index: 5, kind: input, shape index: {}]   ;;  %s2682_s6 = inlined_call_operand.vmem [shape: f32[3,27], index: 6, kind: input, shape index: {}]   ;;  %s2683_s7 = inlined_call_operand.vmem [shape: f32[3,1], index: 7, kind: input, shape index: {}]   ;;  %s2684_s8 = inlined_call_operand.vmem [shape: f32[3,27], index: 8, kind: input, shape index: {}]   ;;  %s2685_s9 = inlined_call_operand.vmem [shape: f32[3,1], index: 9, kind: input, shape index: {}]   ;;  %s2686_s10 = inlined_call_operand.vmem [shape: f32[3,27], index: 10, kind: input, shape index: {}]   ;;  %s2687_s11 = inlined_call_operand.vmem [shape: f32[3,1], index: 11, kind: input, shape index: {}]   ;;  %s2688_s12 = inlined_call_operand.vmem [shape: f32[3,27], index: 12, kind: input, shape index: {}]   ;;  %s2689_s13 = inlined_call_operand.vmem [shape: f32[3,1], index: 13, kind: input, shape index: {}]   ;;  %s2690_s14 = inlined_call_operand.vmem [shape: f32[3,27], index: 14, kind: input, shape index: {}]   ;;  %s2691_s15 = inlined_call_operand.vmem [shape: f32[3,1], index: 15, kind: input, shape index: {}]   ;;  %s2692_s16 = inlined_call_operand.vmem [shape: f32[2,3,256], index: 16, kind: output, shape index: {}]  }
   0x1   :  { %2699 = sst [smem:[#allocation2_spill]] %s2676_s0 }
   0x2 LB: > { %s1911_s22 = sadd.s32 4294967295, %s1970_s21   ;;  %p1915_p0 = scmp.ge.s32.totalorder %s1970_s21, 1  ;;  %s1970_s21 = sphi %s2068_s21, %s26_s21  }
   0x3   : > { %p462_p1 = scmp.lt.s32.totalorder %s1970_s21, 3 }
   0x5   : > { %p463_p2 = pnand %p1915_p0, %p462_p1 }
   0x6   : > { %p512_p3 = scmp.lt.s32.totalorder (!%p463_p2), %s1911_s22, 1  ;;  %s2700_s26 = sld [smem:[#allocation2_spill]] (!%p463_p2) }
   0x7   : > { %466 = sbr.rel (%p463_p2) target bundleno = 2906 (0xb5a), region = 84  ;;  %s1972_s28 = smov (!%p463_p2), 17  }
   0x8   : > { %s1973_s29 = smov (!%p463_p2), 96   ;;  %s1974_s30 = smov (!%p463_p2), 94  }
   0x9   : > { %s1975_s0 = smov (!%p463_p2), 111   ;;  %s1976_s17 = smov (!%p463_p2), 126  }
   0xa   : > { %s1977_s18 = smov (!%p463_p2), 95   ;;  %s1978_s19 = smov (!%p463_p2), 110  }
   0xb   : > { %s1979_s20 = smov (!%p463_p2), 112   ;;  %s1982_s24 = smov (!%p463_p2), 127  }
   0xc   : > { %s2731_s22 = smov (!%p512_p3, %s1911_s22), 1  ;;  %vm532_vm0 = vcmask 138240   ;;  %v1980_v10 = vmov 0.0   ;;  %v1981_v11 = vmov 0   ;;  %v640_v12 = vld [vmem:[%s2681_s5] sm:$0x7]  ;;  %v728_v62 = vlaneseq }
   0xd   : > { %s2693_s23 = sshll.u32 %s2731_s22, 3  ;;  %718 = vmatprep.mubr.f32.mxu0 %v1980_v10  ;;  %952 = vmatprep.mubr.f32.mxu1 %v1980_v10  ;;  %vm2698_vm1 = vcmask 769024   ;;  %vm630_vm2 = vcmask 1043456   ;;  %vm2696_vm3 = vcmask 777216   ;;  %vm2697_vm4 = vcmask 785408  }
   0xe   : > { %s516_s27 = scalar_lea.vmem %s2700_s26, %s2693_s23  ;;  %1961 = vset.pattern.permute.xlu0 %v1981_v11  ;;  %1962 = vset.pattern.permute.xlu1 %v1981_v11  ;;  %vm583_vm5 = vcmask 908288   ;;  %vm594_vm6 = vcmask 900096   ;;  %vm561_vm7 = vcmask 1031168   ;;  %vm572_vm8 = vcmask 916480   ;;  %v639_v60 = vld [vmem:[%s2680_s4] sm:$0x7] }
   0xf   : > { %v525_v0 = vld [vmem:[%s516_s27] sm:$0xff]  ;;  %vm550_vm9 = vcmask 1039360   ;;  %vm646_vm10 = vcmask 293888   ;;  %v729_v63 = vshrl.u32 %v728_v62, 7  ;;  %vm853_vm11 = vcmask 1042432  }
  0x10   : > { %528 = vrot.lane.b32.xlu0 %v525_v0, %s1972_s28  ;;  %v527_v1 = vcombine.high %v525_v0, %v525_v0  ;;  %vm867_vm12 = vcmask 1041408   ;;  %vm2695_vm13 = vcmask 1044480   ;;  %vm859_vm14 = vcmask 1040384  }
  0x11   : > { %v2164_v0 = vsub.s32 0, %v729_v63  ;;  %vm2694_vm15 = vcmask 1046528  }
  0x14   : > { %530 = vrot.lane.b32.xlu0 %v527_v1, %s1972_s28 }
  0x82   : > { %v529_v2 = vpop.permute.xlu0 %528 }
  0x83   : > { %v2087_v3 = vsel %vm532_vm0, 0.0, %v529_v2 }
  0x84   : > { %599 = vrot.lane.b32.xlu1 %v2087_v3, %s1973_s29  ;;  %621 = vrot.lane.b32.xlu0 %v2087_v3, %s1974_s30  ;;  %v541_v6 = vrot.slane %v2087_v3, 4 }
  0x86   : > { %v531_v4 = vpop.permute.xlu0 %530 }
  0x87   : > { %v2094_v5 = vsel %vm532_vm0, %v529_v2, %v531_v4  ;;  %v538_v7 = vsel %vm532_vm0, %v531_v4, 0.0  ;;  %v522_v2 = vld [vmem:[%s2677_s1] sm:$0x3] }
  0x88   : > { %577 = vrot.lane.b32.xlu1 %v2087_v3, %s1975_s0  ;;  %601 = vrot.lane.b32.xlu0 %v2094_v5, %s1973_s29  ;;  %v542_v8 = vrot.slane %v2094_v5, 4  ;;  %v543_v9 = vrot.slane %v538_v7, 4 }
  0x8c   : > { %555 = vrot.lane.b32.xlu1 %v2087_v3, %s1976_s17  ;;  %610 = vrot.lane.b32.xlu0 %v541_v6, %s1977_s18 }
  0x90   : > { %581 = vrot.lane.b32.xlu0 %v538_v7, %s1975_s0  ;;  %623 = vrot.lane.b32.xlu1 %v2094_v5, %s1974_s30 }
  0x94   : > { %588 = vrot.lane.b32.xlu0 %v541_v6, %s1978_s19  ;;  %625 = vrot.lane.b32.xlu1 %v538_v7, %s1974_s30 }
  0x98   : > { %559 = vrot.lane.b32.xlu0 %v538_v7, %s1976_s17  ;;  %603 = vrot.lane.b32.xlu1 %v538_v7, %s1973_s29  ;;  %v2172_v7 = vrot.slane %v522_v2, %v2164_v0 }
  0x9c   : > { %566 = vrot.lane.b32.xlu0 %v541_v6, %s1979_s20  ;;  %579 = vrot.lane.b32.xlu1 %v2094_v5, %s1975_s0 }
  0xa0   : > { %557 = vrot.lane.b32.xlu1 %v2094_v5, %s1976_s17  ;;  %612 = vrot.lane.b32.xlu0 %v542_v8, %s1977_s18 }
  0xa4   : > { %614 = vrot.lane.b32.xlu1 %v543_v9, %s1977_s18  ;;  %592 = vrot.lane.b32.xlu0 %v543_v9, %s1978_s19 }
  0xa8   : > { %590 = vrot.lane.b32.xlu1 %v542_v8, %s1978_s19  ;;  %570 = vrot.lane.b32.xlu0 %v543_v9, %s1979_s20 }
  0xac   : > { %568 = vrot.lane.b32.xlu1 %v542_v8, %s1979_s20  ;;  %548 = vrot.lane.b32.xlu0 %v543_v9, %s1982_s24 }
  0xb0   : > { %546 = vrot.lane.b32.xlu1 %v542_v8, %s1982_s24  ;;  %643 = vperm.xlu0 %1961, %v640_v12  }
  0xb4   : > { %544 = vrot.lane.b32.xlu1 %v541_v6, %s1982_s24  ;;  %v2169_v6 = vsub.s32 1, %v729_v63 }
  0xb6   : > { %v2175_v12 = vrot.slane %v522_v2, %v2169_v6 }
  0xf6   : > { %v600_v13 = vpop.permute.xlu1 %599  ;;  %v622_v14 = vpop.permute.xlu0 %621 }
  0xfa   : > { %v578_v15 = vpop.permute.xlu1 %577  ;;  %v602_v16 = vpop.permute.xlu0 %601 }
  0xfb   : > { %v606_v36 = vsel %vm2697_vm4, %v600_v13, %v602_v16 }
  0xfe   : > { %v556_v17 = vpop.permute.xlu1 %555  ;;  %v611_v18 = vpop.permute.xlu0 %610 }
 0x102   : > { %v624_v19 = vpop.permute.xlu1 %623  ;;  %v582_v20 = vpop.permute.xlu0 %581 }
 0x103   : > { %v628_v24 = vsel %vm2698_vm1, %v622_v14, %v624_v19 }
 0x106   : > { %v626_v21 = vpop.permute.xlu1 %625  ;;  %v589_v22 = vpop.permute.xlu0 %588 }
 0x107   : > { %v629_v23 = vsel %vm2698_vm1, %v624_v19, %v626_v21 }
 0x108   : > { %1920 = vmatprep.subr.msk.mxu0 %vm630_vm2, %v629_v23 }
 0x109   : > { %1921 = vmatpush1.msk.msra.mxu0 %vm630_vm2, %v628_v24 }
 0x10a   : > { %v604_v25 = vpop.permute.xlu1 %603  ;;  %v560_v26 = vpop.permute.xlu0 %559 }
 0x10b   : > { %v607_v34 = vsel %vm2697_vm4, %v602_v16, %v604_v25 }
 0x10e   : > { %v580_v27 = vpop.permute.xlu1 %579  ;;  %v567_v28 = vpop.permute.xlu0 %566 }
 0x10f   : > { %v584_v40 = vsel %vm583_vm5, %v578_v15, %v580_v27  ;;  %v585_v41 = vsel %vm583_vm5, %v580_v27, %v582_v20 }
 0x112   : > { %v558_v29 = vpop.permute.xlu1 %557  ;;  %v613_v30 = vpop.permute.xlu0 %612 }
 0x113   : > { %v617_v31 = vsel %vm2696_vm3, %v611_v18, %v613_v30  ;;  %v562_v48 = vsel %vm561_vm7, %v556_v17, %v558_v29  ;;  %v563_v49 = vsel %vm561_vm7, %v558_v29, %v560_v26 }
 0x114   : > { %v637_v38 = vsel %vm630_vm2, %v606_v36, %v617_v31 }
 0x116   : > { %v615_v32 = vpop.permute.xlu1 %614  ;;  %v593_v33 = vpop.permute.xlu0 %592 }
 0x117   : > { %v618_v35 = vsel %vm2696_vm3, %v613_v30, %v615_v32 }
 0x118   : > { %v638_v37 = vsel %vm630_vm2, %v607_v34, %v618_v35 }
 0x119   : > { %678 = vmatprep.subr.mxu0 %v638_v37 }
 0x11a   : > { %v591_v39 = vpop.permute.xlu1 %590  ;;  %679 = vmatpush1.msra.mxu0 %v637_v38  ;;  %v571_v44 = vpop.permute.xlu0 %570 }
 0x11b   : > { %v595_v42 = vsel %vm594_vm6, %v589_v22, %v591_v39  ;;  %v596_v43 = vsel %vm594_vm6, %v591_v39, %v593_v33 }
 0x11c   : > { %v636_v45 = vsel %vm630_vm2, %v585_v41, %v596_v43  ;;  %v635_v46 = vsel %vm630_vm2, %v584_v40, %v595_v42  ;;  %v874_v40 = vld [vmem:[%s2683_s7] sm:$0x7] }
 0x11d   : > { %680 = vmatprep.subr.mxu0 %v636_v45 }
 0x11e   : > { %v569_v47 = vpop.permute.xlu1 %568  ;;  %681 = vmatpush1.msra.mxu0 %v635_v46  ;;  %v549_v54 = vpop.permute.xlu0 %548 }
 0x11f   : > { %v573_v50 = vsel %vm572_vm8, %v567_v28, %v569_v47  ;;  %v574_v51 = vsel %vm572_vm8, %v569_v47, %v571_v44 }
 0x120   : > { %v634_v52 = vsel %vm630_vm2, %v563_v49, %v574_v51  ;;  %v633_v53 = vsel %vm630_vm2, %v562_v48, %v573_v50 }
 0x121   : > { %682 = vmatprep.subr.mxu0 %v634_v52 }
 0x122   : > { %v547_v55 = vpop.permute.xlu1 %546  ;;  %683 = vmatpush1.msra.mxu0 %v633_v53 }
 0x123   : > { %v552_v56 = vsel %vm550_vm9, %v547_v55, %v549_v54 }
 0x124   : > { %v632_v57 = vsel %vm630_vm2, %v2094_v5, %v552_v56 }
 0x125   : > { %684 = vmatprep.subr.mxu0 %v632_v57 }
 0x126   : > { %v545_v58 = vpop.permute.xlu1 %544 }
 0x127   : > { %v551_v59 = vsel %vm550_vm9, %v545_v58, %v547_v55 }
 0x128   : > { %v631_v61 = vsel %vm630_vm2, %v2087_v3, %v551_v59 }
 0x129   : > { %685 = vmatpush1.msra.mxu0 %v631_v61 }
 0x12a   : > { %1922 = vmatmul.mubr.msk.f32.vlgmr.msra.gmra.mxu0 %vm646_vm10, %v639_v60  ;;  %vm856_vm10 = vcmask 1045504  }
 0x12b   : > { %1406 = vmatprep.mubr.f32.mxu0 %v1980_v10  ;;  %v644_v1 = vpop.permute.xlu0 %643 }
 0x1ea   : > { %v720_v4 = vpop.f32.mrf.mxu0 }
 0x1eb   : > { %v721_v5 = vadd.f32 %v720_v4, %v644_v1 }
 0x1ec   : > { %v722_v3 = vpop.f32.mrf.mxu0 }
 0x1ed   : > { %v725_v8 = vmax.f32 %v721_v5, 0.0  ;;  %v723_v9 = vadd.f32 %v722_v3, %v644_v1 }
 0x1ef   : > { %v726_v11 = vmax.f32 %v723_v9, 0.0  ;;  %v2178_v13 = vmul.f32 %v2172_v7, %v725_v8 }
 0x1f1   : > { %742 = vrot.lane.b32.xlu1 %v2178_v13, %s1972_s28  ;;  %v2183_v14 = vmul.f32 %v2175_v12, %v726_v11 }
 0x1f5   : > { %744 = vrot.lane.b32.xlu1 %v2183_v14, %s1972_s28 }
 0x263   : > { %v743_v15 = vpop.permute.xlu1 %742 }
 0x264   : > { %v2188_v16 = vsel %vm532_vm0, 0.0, %v743_v15 }
 0x265   : > { %845 = vrot.lane.b32.xlu0 %v2188_v16, %s1974_s30  ;;  %v819_v20 = vrot.slane %v2188_v16, 6  ;;  %v806_v21 = vrot.slane %v2188_v16, 1  ;;  %v767_v22 = vrot.slane %v2188_v16, 2  ;;  %v780_v23 = vrot.slane %v2188_v16, 7 }
 0x266   : > { %v832_v24 = vrot.slane %v2188_v16, 3  ;;  %v793_v25 = vrot.slane %v2188_v16, 4  ;;  %v754_v41 = vrot.slane %v2188_v16, 5 }
 0x267   : > { %v745_v17 = vpop.permute.xlu1 %744 }
 0x268   : > { %v2193_v18 = vsel %vm532_vm0, %v743_v15, %v745_v17  ;;  %v751_v19 = vsel %vm532_vm0, %v745_v17, 0.0 }
 0x269   : > { %849 = vrot.lane.b32.xlu1 %v751_v19, %s1974_s30  ;;  %847 = vrot.lane.b32.xlu0 %v2193_v18, %s1974_s30  ;;  %v808_v26 = vrot.slane %v751_v19, 1  ;;  %v807_v27 = vrot.slane %v2193_v18, 1  ;;  %v821_v28 = vrot.slane %v751_v19, 6  ;;  %v820_v29 = vrot.slane %v2193_v18, 6 }
 0x26a   : > { %v769_v30 = vrot.slane %v751_v19, 2  ;;  %v768_v31 = vrot.slane %v2193_v18, 2  ;;  %v782_v32 = vrot.slane %v751_v19, 7  ;;  %v781_v33 = vrot.slane %v2193_v18, 7 }
 0x26b   : > { %v834_v34 = vrot.slane %v751_v19, 3  ;;  %v833_v35 = vrot.slane %v2193_v18, 3  ;;  %v794_v36 = vrot.slane %v2193_v18, 4  ;;  %v795_v37 = vrot.slane %v751_v19, 4 }
 0x26c   : > { %v756_v38 = vrot.slane %v751_v19, 5  ;;  %v755_v39 = vrot.slane %v2193_v18, 5 }
 0x26d   : > { %822 = vrot.lane.b32.xlu1 %v819_v20, %s1973_s29  ;;  %809 = vrot.lane.b32.xlu0 %v806_v21, %s1978_s19 }
 0x271   : > { %770 = vrot.lane.b32.xlu1 %v767_v22, %s1976_s17  ;;  %783 = vrot.lane.b32.xlu0 %v780_v23, %s1979_s20 }
 0x275   : > { %835 = vrot.lane.b32.xlu1 %v832_v24, %s1977_s18  ;;  %796 = vrot.lane.b32.xlu0 %v793_v25, %s1975_s0 }
 0x279   : > { %813 = vrot.lane.b32.xlu1 %v808_v26, %s1978_s19  ;;  %811 = vrot.lane.b32.xlu0 %v807_v27, %s1978_s19 }
 0x27d   : > { %826 = vrot.lane.b32.xlu1 %v821_v28, %s1973_s29  ;;  %824 = vrot.lane.b32.xlu0 %v820_v29, %s1973_s29 }
 0x281   : > { %774 = vrot.lane.b32.xlu1 %v769_v30, %s1976_s17  ;;  %772 = vrot.lane.b32.xlu0 %v768_v31, %s1976_s17 }
 0x285   : > { %787 = vrot.lane.b32.xlu1 %v782_v32, %s1979_s20  ;;  %785 = vrot.lane.b32.xlu0 %v781_v33, %s1979_s20 }
 0x289   : > { %839 = vrot.lane.b32.xlu1 %v834_v34, %s1977_s18  ;;  %837 = vrot.lane.b32.xlu0 %v833_v35, %s1977_s18 }
 0x28d   : > { %798 = vrot.lane.b32.xlu1 %v794_v36, %s1975_s0  ;;  %800 = vrot.lane.b32.xlu0 %v795_v37, %s1975_s0 }
 0x291   : > { %761 = vrot.lane.b32.xlu0 %v756_v38, %s1982_s24  ;;  %759 = vrot.lane.b32.xlu1 %v755_v39, %s1982_s24 }
 0x295   : > { %877 = vperm.xlu0 %1961, %v874_v40   ;;  %757 = vrot.lane.b32.xlu1 %v754_v41, %s1982_s24  ;;  %v873_v40 = vld [vmem:[%s2682_s6] sm:$0x7] }
 0x2d7   : > { %v846_v42 = vpop.permute.xlu0 %845 }
 0x2db   : > { %v850_v43 = vpop.permute.xlu1 %849  ;;  %v848_v44 = vpop.permute.xlu0 %847 }
 0x2dc   : > { %v852_v45 = vsel %vm2698_vm1, %v848_v44, %v850_v43  ;;  %v851_v46 = vsel %vm2698_vm1, %v846_v42, %v848_v44 }
 0x2dd   : > { %1923 = vmatprep.subr.msk.mxu1 %vm853_vm11, %v852_v45 }
 0x2de   : > { %1924 = vmatpush1.msk.msra.mxu1 %vm853_vm11, %v851_v46 }
 0x2df   : > { %v823_v47 = vpop.permute.xlu1 %822  ;;  %v810_v48 = vpop.permute.xlu0 %809 }
 0x2e3   : > { %v771_v49 = vpop.permute.xlu1 %770  ;;  %v784_v50 = vpop.permute.xlu0 %783 }
 0x2e7   : > { %v836_v51 = vpop.permute.xlu1 %835  ;;  %v797_v52 = vpop.permute.xlu0 %796 }
 0x2eb   : > { %v814_v53 = vpop.permute.xlu1 %813  ;;  %v812_v54 = vpop.permute.xlu0 %811 }
 0x2ec   : > { %v815_v63 = vsel %vm594_vm6, %v810_v48, %v812_v54  ;;  %v816_v1 = vsel %vm594_vm6, %v812_v54, %v814_v53 }
 0x2ef   : > { %v827_v55 = vpop.permute.xlu1 %826  ;;  %v825_v56 = vpop.permute.xlu0 %824 }
 0x2f0   : > { %v828_v61 = vsel %vm2697_vm4, %v823_v47, %v825_v56  ;;  %v829_v62 = vsel %vm2697_vm4, %v825_v56, %v827_v55 }
 0x2f1   : > { %v869_v8 = vsel %vm867_vm12, %v816_v1, %v829_v62  ;;  %v868_v9 = vsel %vm867_vm12, %v815_v63, %v828_v61 }
 0x2f3   : > { %v775_v57 = vpop.permute.xlu1 %774  ;;  %v773_v58 = vpop.permute.xlu0 %772 }
 0x2f4   : > { %v776_v20 = vsel %vm561_vm7, %v771_v49, %v773_v58  ;;  %v777_v21 = vsel %vm561_vm7, %v773_v58, %v775_v57 }
 0x2f7   : > { %v788_v59 = vpop.permute.xlu1 %787  ;;  %v786_v60 = vpop.permute.xlu0 %785 }
 0x2f8   : > { %v789_v11 = vsel %vm572_vm8, %v784_v50, %v786_v60  ;;  %v790_v15 = vsel %vm572_vm8, %v786_v60, %v788_v59 }
 0x2f9   : > { %v860_v24 = vsel %vm859_vm14, %v776_v20, %v789_v11  ;;  %v861_v25 = vsel %vm859_vm14, %v777_v21, %v790_v15 }
 0x2fb   : > { %v840_v2 = vpop.permute.xlu1 %839  ;;  %v838_v4 = vpop.permute.xlu0 %837 }
 0x2fc   : > { %v841_v5 = vsel %vm2696_vm3, %v836_v51, %v838_v4  ;;  %v842_v3 = vsel %vm2696_vm3, %v838_v4, %v840_v2 }
 0x2fd   : > { %v872_v17 = vsel %vm2695_vm13, %v869_v8, %v842_v3  ;;  %v871_v19 = vsel %vm2695_vm13, %v868_v9, %v841_v5 }
 0x2fe   : > { %914 = vmatprep.subr.mxu1 %v872_v17 }
 0x2ff   : > { %v799_v22 = vpop.permute.xlu1 %798  ;;  %915 = vmatpush1.msra.mxu1 %v871_v19  ;;  %v801_v23 = vpop.permute.xlu0 %800 }
 0x300   : > { %v802_v26 = vsel %vm583_vm5, %v797_v52, %v799_v22  ;;  %v803_v27 = vsel %vm583_vm5, %v799_v22, %v801_v23  ;;  %v1102_v23 = vld [vmem:[%s2685_s9] sm:$0x7] }
 0x301   : > { %v863_v28 = vsel %vm630_vm2, %v861_v25, %v803_v27  ;;  %v862_v29 = vsel %vm630_vm2, %v860_v24, %v802_v26 }
 0x302   : > { %v866_v30 = vsel %vm2694_vm15, %v863_v28, %v816_v1  ;;  %v865_v31 = vsel %vm2694_vm15, %v862_v29, %v815_v63  ;;  %vm880_vm15 = vcmask 220160  }
 0x303   : > { %916 = vmatprep.subr.mxu1 %v866_v30  ;;  %v762_v32 = vpop.permute.xlu0 %761  ;;  %v760_v33 = vpop.permute.xlu1 %759 }
 0x304   : > { %v764_v34 = vsel %vm550_vm9, %v760_v33, %v762_v32  ;;  %917 = vmatpush1.msra.mxu1 %v865_v31 }
 0x305   : > { %v855_v35 = vsel %vm853_vm11, %v2193_v18, %v764_v34  ;;  %v523_v18 = vld [vmem:[%s2678_s2] sm:$0x3] }
 0x306   : > { %v858_v36 = vsel %vm856_vm10, %v855_v35, %v777_v21  ;;  %v2283_v48 = vrot.slane %v523_v18, %v2169_v6 }
 0x307   : > { %918 = vmatprep.subr.mxu1 %v858_v36  ;;  %v758_v37 = vpop.permute.xlu1 %757 }
 0x308   : > { %v763_v38 = vsel %vm550_vm9, %v758_v37, %v760_v33 }
 0x309   : > { %v854_v39 = vsel %vm853_vm11, %v2188_v16, %v763_v38  ;;  %v2280_v16 = vrot.slane %v523_v18, %v2164_v0 }
 0x30a   : > { %v857_v41 = vsel %vm856_vm10, %v854_v39, %v776_v20 }
 0x30b   : > { %919 = vmatpush1.msra.mxu1 %v857_v41 }
 0x30c   : > { %1925 = vmatmul.mubr.msk.f32.vlgmr.msra.gmra.mxu1 %vm880_vm15, %v873_v40 }
 0x30d   : > { %1179 = vmatprep.mubr.f32.mxu1 %v1980_v10 }
 0x310   : > { %v878_v42 = vpop.permute.xlu0 %877 }
 0x3cc   : > { %v954_v43 = vpop.f32.mrf.mxu1 }
 0x3cd   : > { %v955_v44 = vadd.f32 %v954_v43, %v878_v42 }
 0x3ce   : > { %v956_v45 = vpop.f32.mrf.mxu1 }
 0x3cf   : > { %v959_v46 = vmax.f32 %v955_v44, 0.0  ;;  %v957_v47 = vadd.f32 %v956_v45, %v878_v42 }
 0x3d1   : > { %v2286_v49 = vmul.f32 %v2280_v16, %v959_v46  ;;  %v960_v50 = vmax.f32 %v957_v47, 0.0 }
 0x3d3   : > { %v2289_v51 = vmul.f32 %v2283_v48, %v960_v50  ;;  %976 = vrot.lane.b32.xlu1 %v2286_v49, %s1972_s28 }
 0x3d5   : > { %978 = vrot.lane.b32.xlu0 %v2289_v51, %s1972_s28 }
 0x445   : > { %v977_v52 = vpop.permute.xlu1 %976 }
 0x446   : > { %v2296_v53 = vsel %vm532_vm0, 0.0, %v977_v52 }
 0x447   : > { %v979_v54 = vpop.permute.xlu0 %978  ;;  %1079 = vrot.lane.b32.xlu1 %v2296_v53, %s1974_s30  ;;  %v1053_v57 = vrot.slane %v2296_v53, 6  ;;  %v1040_v58 = vrot.slane %v2296_v53, 1  ;;  %v1001_v59 = vrot.slane %v2296_v53, 2  ;;  %v1014_v60 = vrot.slane %v2296_v53, 7 }
 0x448   : > { %v985_v55 = vsel %vm532_vm0, %v979_v54, 0.0  ;;  %v2303_v56 = vsel %vm532_vm0, %v977_v52, %v979_v54  ;;  %v1066_v61 = vrot.slane %v2296_v53, 3  ;;  %v1027_v62 = vrot.slane %v2296_v53, 4 }
 0x449   : > { %1083 = vrot.lane.b32.xlu0 %v985_v55, %s1974_s30  ;;  %v1042_v63 = vrot.slane %v985_v55, 1  ;;  %v1041_v1 = vrot.slane %v2303_v56, 1  ;;  %v1055_v2 = vrot.slane %v985_v55, 6  ;;  %v1054_v4 = vrot.slane %v2303_v56, 6 }
 0x44a   : > { %v1003_v5 = vrot.slane %v985_v55, 2  ;;  %v1002_v3 = vrot.slane %v2303_v56, 2  ;;  %v1016_v8 = vrot.slane %v985_v55, 7  ;;  %v1015_v9 = vrot.slane %v2303_v56, 7 }
 0x44b   : > { %1081 = vrot.lane.b32.xlu1 %v2303_v56, %s1974_s30  ;;  %v1068_v11 = vrot.slane %v985_v55, 3  ;;  %v1067_v15 = vrot.slane %v2303_v56, 3  ;;  %v1028_v17 = vrot.slane %v2303_v56, 4  ;;  %v1029_v19 = vrot.slane %v985_v55, 4 }
 0x44c   : > { %v989_v20 = vrot.slane %v2303_v56, 5  ;;  %v990_v21 = vrot.slane %v985_v55, 5  ;;  %v988_v22 = vrot.slane %v2296_v53, 5 }
 0x44d   : > { %1056 = vrot.lane.b32.xlu0 %v1053_v57, %s1973_s29 }
 0x44f   : > { %1043 = vrot.lane.b32.xlu1 %v1040_v58, %s1978_s19 }
 0x451   : > { %1004 = vrot.lane.b32.xlu0 %v1001_v59, %s1976_s17 }
 0x453   : > { %1017 = vrot.lane.b32.xlu1 %v1014_v60, %s1979_s20 }
 0x455   : > { %1069 = vrot.lane.b32.xlu0 %v1066_v61, %s1977_s18 }
 0x457   : > { %1030 = vrot.lane.b32.xlu1 %v1027_v62, %s1975_s0 }
 0x459   : > { %1047 = vrot.lane.b32.xlu0 %v1042_v63, %s1978_s19 }
 0x45b   : > { %1045 = vrot.lane.b32.xlu1 %v1041_v1, %s1978_s19 }
 0x45d   : > { %1060 = vrot.lane.b32.xlu0 %v1055_v2, %s1973_s29 }
 0x45f   : > { %1058 = vrot.lane.b32.xlu1 %v1054_v4, %s1973_s29 }
 0x461   : > { %1008 = vrot.lane.b32.xlu0 %v1003_v5, %s1976_s17 }
 0x463   : > { %1006 = vrot.lane.b32.xlu1 %v1002_v3, %s1976_s17 }
 0x465   : > { %1021 = vrot.lane.b32.xlu0 %v1016_v8, %s1979_s20 }
 0x467   : > { %1019 = vrot.lane.b32.xlu1 %v1015_v9, %s1979_s20 }
 0x469   : > { %1073 = vrot.lane.b32.xlu0 %v1068_v11, %s1977_s18 }
 0x46b   : > { %1071 = vrot.lane.b32.xlu1 %v1067_v15, %s1977_s18 }
 0x46d   : > { %1032 = vrot.lane.b32.xlu0 %v1028_v17, %s1975_s0 }
 0x46f   : > { %1034 = vrot.lane.b32.xlu1 %v1029_v19, %s1975_s0 }
 0x471   : > { %993 = vrot.lane.b32.xlu0 %v989_v20, %s1982_s24 }
 0x473   : > { %995 = vrot.lane.b32.xlu1 %v990_v21, %s1982_s24 }
 0x475   : > { %991 = vrot.lane.b32.xlu0 %v988_v22, %s1982_s24 }
 0x477   : > { %1105 = vperm.xlu1 %1962, %v1102_v23  }
 0x4b9   : > { %v1080_v24 = vpop.permute.xlu1 %1079 }
 0x4bb   : > { %v1084_v25 = vpop.permute.xlu0 %1083 }
 0x4bd   : > { %v1082_v26 = vpop.permute.xlu1 %1081 }
 0x4be   : > { %v1085_v27 = vsel %vm2698_vm1, %v1080_v24, %v1082_v26  ;;  %v1086_v28 = vsel %vm2698_vm1, %v1082_v26, %v1084_v25  ;;  %v1101_v26 = vld [vmem:[%s2684_s8] sm:$0x7] }
 0x4bf   : > { %v1057_v29 = vpop.permute.xlu0 %1056  ;;  %1926 = vmatprep.subr.msk.mxu1 %vm853_vm11, %v1086_v28  ;;  %v524_v28 = vld [vmem:[%s2679_s3] sm:$0x3] }
 0x4c0   : > { %1927 = vmatpush1.msk.msra.mxu1 %vm853_vm11, %v1085_v27 }
 0x4c1   : > { %v1044_v30 = vpop.permute.xlu1 %1043 }
 0x4c3   : > { %v1005_v31 = vpop.permute.xlu0 %1004 }
 0x4c5   : > { %v1018_v32 = vpop.permute.xlu1 %1017 }
 0x4c7   : > { %v1070_v33 = vpop.permute.xlu0 %1069 }
 0x4c9   : > { %v1031_v34 = vpop.permute.xlu1 %1030 }
 0x4cb   : > { %v1048_v35 = vpop.permute.xlu0 %1047 }
 0x4cd   : > { %v1046_v36 = vpop.permute.xlu1 %1045 }
 0x4ce   : > { %v1049_v45 = vsel %vm594_vm6, %v1044_v30, %v1046_v36  ;;  %v1050_v46 = vsel %vm594_vm6, %v1046_v36, %v1048_v35 }
 0x4cf   : > { %v1061_v37 = vpop.permute.xlu0 %1060 }
 0x4d1   : > { %v1059_v38 = vpop.permute.xlu1 %1058 }
 0x4d2   : > { %v1062_v42 = vsel %vm2697_vm4, %v1057_v29, %v1059_v38  ;;  %v1063_v43 = vsel %vm2697_vm4, %v1059_v38, %v1061_v37 }
 0x4d3   : > { %v1009_v39 = vpop.permute.xlu0 %1008  ;;  %v1097_v47 = vsel %vm867_vm12, %v1049_v45, %v1062_v42  ;;  %v1098_v57 = vsel %vm867_vm12, %v1050_v46, %v1063_v43 }
 0x4d5   : > { %v1007_v40 = vpop.permute.xlu1 %1006 }
 0x4d6   : > { %v1010_v62 = vsel %vm561_vm7, %v1005_v31, %v1007_v40  ;;  %v1011_v1 = vsel %vm561_vm7, %v1007_v40, %v1009_v39 }
 0x4d7   : > { %v1022_v41 = vpop.permute.xlu0 %1021 }
 0x4d9   : > { %v1020_v18 = vpop.permute.xlu1 %1019 }
 0x4da   : > { %v1023_v52 = vsel %vm572_vm8, %v1018_v32, %v1020_v18  ;;  %v1024_v58 = vsel %vm572_vm8, %v1020_v18, %v1022_v41 }
 0x4db   : > { %v1074_v44 = vpop.permute.xlu0 %1073  ;;  %v1091_v2 = vsel %vm859_vm14, %v1010_v62, %v1023_v52  ;;  %v1092_v5 = vsel %vm859_vm14, %v1011_v1, %v1024_v58 }
 0x4dd   : > { %v1072_v50 = vpop.permute.xlu1 %1071 }
 0x4de   : > { %v1075_v54 = vsel %vm2696_vm3, %v1070_v33, %v1072_v50  ;;  %v1076_v55 = vsel %vm2696_vm3, %v1072_v50, %v1074_v44 }
 0x4df   : > { %v1033_v59 = vpop.permute.xlu0 %1032  ;;  %v1100_v60 = vsel %vm2695_vm13, %v1098_v57, %v1076_v55  ;;  %v1099_v61 = vsel %vm2695_vm13, %v1097_v47, %v1075_v54  ;;  %vm2701_vm13 = vcmask 1046528  }
 0x4e0   : > { %v1036_v63 = vsel %vm583_vm5, %v1031_v34, %v1033_v59  ;;  %1141 = vmatprep.subr.mxu1 %v1100_v60  ;;  %vm2702_vm3 = vmmov %vm2701_vm13  ;;  %v1196_v34 = vrot.slane %v524_v28, %v2169_v6 }
 0x4e1   : > { %1142 = vmatpush1.msra.mxu1 %v1099_v61  ;;  %v1035_v4 = vpop.permute.xlu1 %1034  ;;  %v1093_v3 = vsel %vm630_vm2, %v1091_v2, %v1036_v63 }
 0x4e2   : > { %v1037_v8 = vsel %vm583_vm5, %v1033_v59, %v1035_v4  ;;  %v1095_v19 = vsel %vm2702_vm3, %v1093_v3, %v1049_v45  ;;  %v1329_v4 = vld [vmem:[%s2687_s11] sm:$0x7]  ;;  %vm2703_vm3 = vcmask 777216  }
 0x4e3   : > { %v994_v9 = vpop.permute.xlu0 %993  ;;  %v1094_v11 = vsel %vm630_vm2, %v1092_v5, %v1037_v8 }
 0x4e4   : > { %v1096_v15 = vsel %vm2701_vm13, %v1094_v11, %v1050_v46  ;;  %vm2704_vm13 = vmmov %vm2703_vm3 }
 0x4e5   : > { %1143 = vmatprep.subr.mxu1 %v1096_v15  ;;  %v996_v17 = vpop.permute.xlu1 %995 }
 0x4e6   : > { %v998_v20 = vsel %vm550_vm9, %v994_v9, %v996_v17  ;;  %1144 = vmatpush1.msra.mxu1 %v1095_v19 }
 0x4e7   : > { %v992_v21 = vpop.permute.xlu0 %991  ;;  %v1088_v22 = vsel %vm853_vm11, %v2303_v56, %v998_v20 }
 0x4e8   : > { %v997_v23 = vsel %vm550_vm9, %v992_v21, %v994_v9  ;;  %v1090_v24 = vsel %vm856_vm10, %v1088_v22, %v1011_v1 }
 0x4e9   : > { %v1087_v25 = vsel %vm853_vm11, %v2296_v53, %v997_v23  ;;  %1145 = vmatprep.subr.mxu1 %v1090_v24  ;;  %v1192_v53 = vrot.slane %v524_v28, %v2164_v0 }
 0x4ea   : > { %v1089_v27 = vsel %vm856_vm10, %v1087_v25, %v1010_v62 }
 0x4eb   : > { %1146 = vmatpush1.msra.mxu1 %v1089_v27 }
 0x4ec   : > { %1928 = vmatmul.mubr.msk.f32.vlgmr.msra.gmra.mxu1 %vm880_vm15, %v1101_v26 }
 0x4ed   : > { %1624 = vmatprep.mubr.f32.mxu1 %v1980_v10 }
 0x4f2   : > { %v1106_v56 = vpop.permute.xlu1 %1105 }
 0x5ac   : > { %v1181_v29 = vpop.f32.mrf.mxu1 }
 0x5ad   : > { %v1182_v30 = vadd.f32 %v1181_v29, %v1106_v56 }
 0x5ae   : > { %v1183_v31 = vpop.f32.mrf.mxu1 }
 0x5af   : > { %v1186_v32 = vmax.f32 %v1182_v30, 0.0  ;;  %v1184_v33 = vadd.f32 %v1183_v31, %v1106_v56 }
 0x5b1   : > { %v1199_v35 = vmul.f32 %v1192_v53, %v1186_v32  ;;  %v1187_v36 = vmax.f32 %v1184_v33, 0.0 }
 0x5b3   : > { %v1200_v37 = vmul.f32 %v1196_v34, %v1187_v36  ;;  %1203 = vrot.lane.b32.xlu0 %v1199_v35, %s1972_s28 }
 0x5b5   : > { %1205 = vrot.lane.b32.xlu1 %v1200_v37, %s1972_s28 }
 0x625   : > { %v1204_v38 = vpop.permute.xlu0 %1203 }
 0x626   : > { %v2392_v39 = vsel %vm532_vm0, 0.0, %v1204_v38 }
 0x627   : > { %v1206_v40 = vpop.permute.xlu1 %1205  ;;  %1306 = vrot.lane.b32.xlu0 %v2392_v39, %s1974_s30  ;;  %v1280_v41 = vrot.slane %v2392_v39, 6  ;;  %v1267_v18 = vrot.slane %v2392_v39, 1  ;;  %v1228_v42 = vrot.slane %v2392_v39, 2  ;;  %v1241_v43 = vrot.slane %v2392_v39, 7 }
 0x628   : > { %v1212_v0 = vsel %vm532_vm0, %v1206_v40, 0.0  ;;  %v2399_v6 = vsel %vm532_vm0, %v1204_v38, %v1206_v40  ;;  %v1293_v44 = vrot.slane %v2392_v39, 3  ;;  %v1254_v45 = vrot.slane %v2392_v39, 4 }
 0x629   : > { %1310 = vrot.lane.b32.xlu1 %v1212_v0, %s1974_s30  ;;  %v1269_v46 = vrot.slane %v1212_v0, 1  ;;  %v1268_v47 = vrot.slane %v2399_v6, 1  ;;  %v1282_v50 = vrot.slane %v1212_v0, 6  ;;  %v1281_v52 = vrot.slane %v2399_v6, 6 }
 0x62a   : > { %v1230_v54 = vrot.slane %v1212_v0, 2  ;;  %v1229_v55 = vrot.slane %v2399_v6, 2  ;;  %v1243_v57 = vrot.slane %v1212_v0, 7  ;;  %v1242_v58 = vrot.slane %v2399_v6, 7 }
 0x62b   : > { %1308 = vrot.lane.b32.xlu0 %v2399_v6, %s1974_s30  ;;  %v1295_v59 = vrot.slane %v1212_v0, 3  ;;  %v1294_v60 = vrot.slane %v2399_v6, 3  ;;  %v1255_v61 = vrot.slane %v2399_v6, 4  ;;  %v1256_v62 = vrot.slane %v1212_v0, 4 }
 0x62c   : > { %v1216_v63 = vrot.slane %v2399_v6, 5  ;;  %v1217_v1 = vrot.slane %v1212_v0, 5  ;;  %v1215_v2 = vrot.slane %v2392_v39, 5 }
 0x62d   : > { %1283 = vrot.lane.b32.xlu1 %v1280_v41, %s1973_s29 }
 0x62f   : > { %1270 = vrot.lane.b32.xlu0 %v1267_v18, %s1978_s19 }
 0x631   : > { %1231 = vrot.lane.b32.xlu1 %v1228_v42, %s1976_s17 }
 0x633   : > { %1244 = vrot.lane.b32.xlu0 %v1241_v43, %s1979_s20 }
 0x635   : > { %1296 = vrot.lane.b32.xlu1 %v1293_v44, %s1977_s18 }
 0x637   : > { %1257 = vrot.lane.b32.xlu0 %v1254_v45, %s1975_s0 }
 0x639   : > { %1274 = vrot.lane.b32.xlu1 %v1269_v46, %s1978_s19 }
 0x63b   : > { %1272 = vrot.lane.b32.xlu0 %v1268_v47, %s1978_s19 }
 0x63d   : > { %1287 = vrot.lane.b32.xlu1 %v1282_v50, %s1973_s29 }
 0x63f   : > { %1285 = vrot.lane.b32.xlu0 %v1281_v52, %s1973_s29 }
 0x641   : > { %1235 = vrot.lane.b32.xlu1 %v1230_v54, %s1976_s17 }
 0x643   : > { %1233 = vrot.lane.b32.xlu0 %v1229_v55, %s1976_s17 }
 0x645   : > { %1248 = vrot.lane.b32.xlu1 %v1243_v57, %s1979_s20 }
 0x647   : > { %1246 = vrot.lane.b32.xlu0 %v1242_v58, %s1979_s20 }
 0x649   : > { %1300 = vrot.lane.b32.xlu1 %v1295_v59, %s1977_s18 }
 0x64b   : > { %1298 = vrot.lane.b32.xlu0 %v1294_v60, %s1977_s18 }
 0x64d   : > { %1259 = vrot.lane.b32.xlu1 %v1255_v61, %s1975_s0 }
 0x64f   : > { %1261 = vrot.lane.b32.xlu0 %v1256_v62, %s1975_s0 }
 0x651   : > { %1220 = vrot.lane.b32.xlu1 %v1216_v63, %s1982_s24 }
 0x653   : > { %1222 = vrot.lane.b32.xlu0 %v1217_v1, %s1982_s24 }
 0x655   : > { %1218 = vrot.lane.b32.xlu1 %v1215_v2, %s1982_s24 }
 0x657   : > { %1332 = vperm.xlu0 %1961, %v1329_v4  }
 0x699   : > { %v1307_v5 = vpop.permute.xlu0 %1306 }
 0x69b   : > { %v1311_v3 = vpop.permute.xlu1 %1310 }
 0x69d   : > { %v1309_v8 = vpop.permute.xlu0 %1308 }
 0x69e   : > { %v1312_v9 = vsel %vm2698_vm1, %v1307_v5, %v1309_v8  ;;  %v1313_v11 = vsel %vm2698_vm1, %v1309_v8, %v1311_v3  ;;  %v1328_v5 = vld [vmem:[%s2686_s10] sm:$0x7] }
 0x69f   : > { %v1284_v15 = vpop.permute.xlu1 %1283  ;;  %1929 = vmatprep.subr.msk.mxu0 %vm853_vm11, %v1313_v11 }
 0x6a0   : > { %1930 = vmatpush1.msk.msra.mxu0 %vm853_vm11, %v1312_v9 }
 0x6a1   : > { %v1271_v17 = vpop.permute.xlu0 %1270 }
 0x6a3   : > { %v1232_v19 = vpop.permute.xlu1 %1231 }
 0x6a5   : > { %v1245_v20 = vpop.permute.xlu0 %1244 }
 0x6a7   : > { %v1297_v21 = vpop.permute.xlu1 %1296 }
 0x6a9   : > { %v1258_v22 = vpop.permute.xlu0 %1257 }
 0x6ab   : > { %v1275_v23 = vpop.permute.xlu1 %1274 }
 0x6ad   : > { %v1273_v24 = vpop.permute.xlu0 %1272 }
 0x6ae   : > { %v1276_v32 = vsel %vm594_vm6, %v1271_v17, %v1273_v24  ;;  %v1277_v33 = vsel %vm594_vm6, %v1273_v24, %v1275_v23 }
 0x6af   : > { %v1288_v25 = vpop.permute.xlu1 %1287 }
 0x6b1   : > { %v1286_v26 = vpop.permute.xlu0 %1285 }
 0x6b2   : > { %v1289_v30 = vsel %vm2697_vm4, %v1284_v15, %v1286_v26  ;;  %v1290_v53 = vsel %vm2697_vm4, %v1286_v26, %v1288_v25  ;;  %vm2705_vm4 = vcmask 1044480  }
 0x6b3   : > { %v1236_v27 = vpop.permute.xlu1 %1235  ;;  %v1324_v34 = vsel %vm867_vm12, %v1276_v32, %v1289_v30  ;;  %v1325_v40 = vsel %vm867_vm12, %v1277_v33, %v1290_v53  ;;  %vm2706_vm1 = vmmov %vm2705_vm4 }
 0x6b5   : > { %v1234_v56 = vpop.permute.xlu0 %1233 }
 0x6b6   : > { %v1237_v43 = vsel %vm561_vm7, %v1232_v19, %v1234_v56  ;;  %v1238_v45 = vsel %vm561_vm7, %v1234_v56, %v1236_v27 }
 0x6b7   : > { %v1249_v28 = vpop.permute.xlu1 %1248 }
 0x6b9   : > { %v1247_v29 = vpop.permute.xlu0 %1246 }
 0x6ba   : > { %v1250_v36 = vsel %vm572_vm8, %v1245_v20, %v1247_v29  ;;  %v1251_v0 = vsel %vm572_vm8, %v1247_v29, %v1249_v28 }
 0x6bb   : > { %v1301_v31 = vpop.permute.xlu1 %1300  ;;  %v1318_v46 = vsel %vm859_vm14, %v1237_v43, %v1250_v36  ;;  %v1319_v50 = vsel %vm859_vm14, %v1238_v45, %v1251_v0 }
 0x6bd   : > { %v1299_v35 = vpop.permute.xlu0 %1298 }
 0x6be   : > { %v1302_v37 = vsel %vm2703_vm3, %v1297_v21, %v1299_v35  ;;  %v1303_v38 = vsel %vm2704_vm13, %v1299_v35, %v1301_v31  ;;  %vm2709_vm3 = vcmask 769024  }
 0x6bf   : > { %v1260_v41 = vpop.permute.xlu1 %1259  ;;  %v1327_v18 = vsel %vm2705_vm4, %v1325_v40, %v1303_v38  ;;  %v1326_v42 = vsel %vm2706_vm1, %v1324_v34, %v1302_v37  ;;  %vm2707_vm1 = vcmask 1046528   ;;  %vm2710_vm13 = vmmov %vm2709_vm3 }
 0x6c0   : > { %v1263_v44 = vsel %vm583_vm5, %v1258_v22, %v1260_v41  ;;  %1368 = vmatprep.subr.mxu0 %v1327_v18  ;;  %vm2708_vm4 = vmmov %vm2707_vm1  ;;  %v1547_v18 = vld [vmem:[%s2689_s13] sm:$0x7] }
 0x6c1   : > { %1369 = vmatpush1.msra.mxu0 %v1326_v42  ;;  %v1262_v47 = vpop.permute.xlu0 %1261  ;;  %v1320_v52 = vsel %vm630_vm2, %v1318_v46, %v1263_v44 }
 0x6c2   : > { %v1264_v54 = vsel %vm583_vm5, %v1260_v41, %v1262_v47  ;;  %v1322_v60 = vsel %vm2708_vm4, %v1320_v52, %v1276_v32 }
 0x6c3   : > { %v1221_v55 = vpop.permute.xlu1 %1220  ;;  %v1321_v57 = vsel %vm630_vm2, %v1319_v50, %v1264_v54 }
 0x6c4   : > { %v1323_v58 = vsel %vm2707_vm1, %v1321_v57, %v1277_v33  ;;  %vm2711_vm1 = vcmask 785408  }
 0x6c5   : > { %1370 = vmatprep.subr.mxu0 %v1323_v58  ;;  %v1223_v59 = vpop.permute.xlu0 %1222  ;;  %vm2712_vm4 = vmmov %vm2711_vm1 }
 0x6c6   : > { %v1225_v61 = vsel %vm550_vm9, %v1221_v55, %v1223_v59  ;;  %1371 = vmatpush1.msra.mxu0 %v1322_v60 }
 0x6c7   : > { %v1219_v62 = vpop.permute.xlu1 %1218  ;;  %v1315_v63 = vsel %vm853_vm11, %v2399_v6, %v1225_v61 }
 0x6c8   : > { %v1224_v1 = vsel %vm550_vm9, %v1219_v62, %v1221_v55  ;;  %v1317_v2 = vsel %vm856_vm10, %v1315_v63, %v1238_v45 }
 0x6c9   : > { %v1314_v4 = vsel %vm853_vm11, %v2392_v39, %v1224_v1  ;;  %1372 = vmatprep.subr.mxu0 %v1317_v2 }
 0x6ca   : > { %v1316_v3 = vsel %vm856_vm10, %v1314_v4, %v1237_v43 }
 0x6cb   : > { %1373 = vmatpush1.msra.mxu0 %v1316_v3 }
 0x6cc   : > { %1931 = vmatmul.mubr.msk.f32.vlgmr.msra.gmra.mxu0 %vm880_vm15, %v1328_v5 }
 0x6cd   : > { %1842 = vmatprep.mubr.f32.mxu0 %v1980_v10 }
 0x6d2   : > { %v1333_v6 = vpop.permute.xlu0 %1332 }
 0x78c   : > { %v1408_v8 = vpop.f32.mrf.mxu0 }
 0x78d   : > { %v1409_v9 = vadd.f32 %v1408_v8, %v1333_v6 }
 0x78e   : > { %v1410_v11 = vpop.f32.mrf.mxu0 }
 0x78f   : > { %v1413_v15 = vmax.f32 %v1409_v9, 0.0  ;;  %v1411_v17 = vadd.f32 %v1410_v11, %v1333_v6 }
 0x791   : > { %v1415_v39 = vmul.f32 %v1413_v15, %v2280_v16  ;;  %v1414_v19 = vmax.f32 %v1411_v17, 0.0 }
 0x793   : > { %v1417_v20 = vadd.f32 %v1415_v39, %v2286_v49  ;;  %v1416_v21 = vmul.f32 %v1414_v19, %v2283_v48 }
 0x795   : > { %v1418_v22 = vadd.f32 %v1416_v21, %v2289_v51  ;;  %1421 = vrot.lane.b32.xlu1 %v1417_v20, %s1972_s28 }
 0x797   : > { %1423 = vrot.lane.b32.xlu0 %v1418_v22, %s1972_s28 }
 0x807   : > { %v1422_v10 = vpop.permute.xlu1 %1421 }
 0x808   : > { %v2487_v23 = vsel %vm532_vm0, 0.0, %v1422_v10 }
 0x809   : > { %v1424_v24 = vpop.permute.xlu0 %1423  ;;  %1524 = vrot.lane.b32.xlu1 %v2487_v23, %s1974_s30  ;;  %v1498_v49 = vrot.slane %v2487_v23, 6  ;;  %v1485_v51 = vrot.slane %v2487_v23, 1  ;;  %v1446_v25 = vrot.slane %v2487_v23, 2  ;;  %v1459_v26 = vrot.slane %v2487_v23, 7 }
 0x80a   : > { %v1430_v16 = vsel %vm532_vm0, %v1424_v24, 0.0  ;;  %v2494_v48 = vsel %vm532_vm0, %v1422_v10, %v1424_v24  ;;  %v1511_v27 = vrot.slane %v2487_v23, 3  ;;  %v1472_v56 = vrot.slane %v2487_v23, 4 }
 0x80b   : > { %1528 = vrot.lane.b32.xlu0 %v1430_v16, %s1974_s30  ;;  %v1487_v28 = vrot.slane %v1430_v16, 1  ;;  %v1486_v29 = vrot.slane %v2494_v48, 1  ;;  %v1500_v30 = vrot.slane %v1430_v16, 6  ;;  %v1499_v53 = vrot.slane %v2494_v48, 6 }
 0x80c   : > { %v1448_v31 = vrot.slane %v1430_v16, 2  ;;  %v1447_v32 = vrot.slane %v2494_v48, 2  ;;  %v1461_v33 = vrot.slane %v1430_v16, 7  ;;  %v1460_v34 = vrot.slane %v2494_v48, 7 }
 0x80d   : > { %1526 = vrot.lane.b32.xlu1 %v2494_v48, %s1974_s30  ;;  %v1513_v35 = vrot.slane %v1430_v16, 3  ;;  %v1512_v36 = vrot.slane %v2494_v48, 3  ;;  %v1473_v37 = vrot.slane %v2494_v48, 4  ;;  %v1474_v38 = vrot.slane %v1430_v16, 4 }
 0x80e   : > { %v1434_v40 = vrot.slane %v2494_v48, 5  ;;  %v1435_v0 = vrot.slane %v1430_v16, 5  ;;  %v1433_v41 = vrot.slane %v2487_v23, 5 }
 0x80f   : > { %1501 = vrot.lane.b32.xlu0 %v1498_v49, %s1973_s29 }
 0x811   : > { %1488 = vrot.lane.b32.xlu1 %v1485_v51, %s1978_s19 }
 0x813   : > { %1449 = vrot.lane.b32.xlu0 %v1446_v25, %s1976_s17 }
 0x815   : > { %1462 = vrot.lane.b32.xlu1 %v1459_v26, %s1979_s20 }
 0x817   : > { %1514 = vrot.lane.b32.xlu0 %v1511_v27, %s1977_s18 }
 0x819   : > { %1475 = vrot.lane.b32.xlu1 %v1472_v56, %s1975_s0 }
 0x81b   : > { %1492 = vrot.lane.b32.xlu0 %v1487_v28, %s1978_s19 }
 0x81d   : > { %1490 = vrot.lane.b32.xlu1 %v1486_v29, %s1978_s19 }
 0x81f   : > { %1505 = vrot.lane.b32.xlu0 %v1500_v30, %s1973_s29 }
 0x821   : > { %1503 = vrot.lane.b32.xlu1 %v1499_v53, %s1973_s29 }
 0x823   : > { %1453 = vrot.lane.b32.xlu0 %v1448_v31, %s1976_s17 }
 0x825   : > { %1451 = vrot.lane.b32.xlu1 %v1447_v32, %s1976_s17 }
 0x827   : > { %1466 = vrot.lane.b32.xlu0 %v1461_v33, %s1979_s20 }
 0x829   : > { %1464 = vrot.lane.b32.xlu1 %v1460_v34, %s1979_s20 }
 0x82b   : > { %1518 = vrot.lane.b32.xlu0 %v1513_v35, %s1977_s18 }
 0x82d   : > { %1516 = vrot.lane.b32.xlu1 %v1512_v36, %s1977_s18 }
 0x82f   : > { %1477 = vrot.lane.b32.xlu0 %v1473_v37, %s1975_s0 }
 0x831   : > { %1479 = vrot.lane.b32.xlu1 %v1474_v38, %s1975_s0  ;;  %v1546_v38 = vld [vmem:[%s2688_s12] sm:$0x7] }
 0x833   : > { %1438 = vrot.lane.b32.xlu0 %v1434_v40, %s1982_s24 }
 0x835   : > { %1440 = vrot.lane.b32.xlu1 %v1435_v0, %s1982_s24 }
 0x837   : > { %1436 = vrot.lane.b32.xlu0 %v1433_v41, %s1982_s24 }
 0x839   : > { %1550 = vperm.xlu1 %1962, %v1547_v18  }
 0x87b   : > { %v1525_v42 = vpop.permute.xlu1 %1524 }
 0x87d   : > { %v1529_v43 = vpop.permute.xlu0 %1528 }
 0x87f   : > { %v1527_v44 = vpop.permute.xlu1 %1526 }
 0x880   : > { %v1530_v45 = vsel %vm2709_vm3, %v1525_v42, %v1527_v44  ;;  %v1531_v46 = vsel %vm2710_vm13, %v1527_v44, %v1529_v43  ;;  %vm2713_vm3 = vcmask 777216  }
 0x881   : > { %v1502_v47 = vpop.permute.xlu0 %1501  ;;  %1932 = vmatprep.subr.msk.mxu1 %vm853_vm11, %v1531_v46  ;;  %vm2714_vm13 = vmmov %vm2713_vm3 }
 0x882   : > { %1933 = vmatpush1.msk.msra.mxu1 %vm853_vm11, %v1530_v45 }
 0x883   : > { %v1489_v50 = vpop.permute.xlu1 %1488 }
 0x885   : > { %v1450_v52 = vpop.permute.xlu0 %1449 }
 0x887   : > { %v1463_v54 = vpop.permute.xlu1 %1462 }
 0x889   : > { %v1515_v55 = vpop.permute.xlu0 %1514 }
 0x88b   : > { %v1476_v57 = vpop.permute.xlu1 %1475 }
 0x88d   : > { %v1493_v58 = vpop.permute.xlu0 %1492 }
 0x88f   : > { %v1491_v59 = vpop.permute.xlu1 %1490 }
 0x890   : > { %v1494_v6 = vsel %vm594_vm6, %v1489_v50, %v1491_v59  ;;  %v1495_v8 = vsel %vm594_vm6, %v1491_v59, %v1493_v58 }
 0x891   : > { %v1506_v60 = vpop.permute.xlu0 %1505 }
 0x893   : > { %v1504_v61 = vpop.permute.xlu1 %1503 }
 0x894   : > { %v1507_v4 = vsel %vm2711_vm1, %v1502_v47, %v1504_v61  ;;  %v1508_v5 = vsel %vm2712_vm4, %v1504_v61, %v1506_v60  ;;  %vm2715_vm1 = vcmask 1044480  }
 0x895   : > { %v1454_v62 = vpop.permute.xlu0 %1453  ;;  %v1542_v9 = vsel %vm867_vm12, %v1494_v6, %v1507_v4  ;;  %v1543_v19 = vsel %vm867_vm12, %v1495_v8, %v1508_v5  ;;  %vm2716_vm4 = vmmov %vm2715_vm1 }
 0x897   : > { %v1452_v63 = vpop.permute.xlu1 %1451 }
 0x898   : > { %v1455_v24 = vsel %vm561_vm7, %v1450_v52, %v1452_v63  ;;  %v1456_v49 = vsel %vm561_vm7, %v1452_v63, %v1454_v62 }
 0x899   : > { %v1467_v1 = vpop.permute.xlu0 %1466 }
 0x89b   : > { %v1465_v2 = vpop.permute.xlu1 %1464 }
 0x89c   : > { %v1468_v15 = vsel %vm572_vm8, %v1463_v54, %v1465_v2  ;;  %v1469_v20 = vsel %vm572_vm8, %v1465_v2, %v1467_v1 }
 0x89d   : > { %v1519_v3 = vpop.permute.xlu0 %1518  ;;  %v1536_v51 = vsel %vm859_vm14, %v1455_v24, %v1468_v15  ;;  %v1537_v26 = vsel %vm859_vm14, %v1456_v49, %v1469_v20 }
 0x89f   : > { %v1517_v11 = vpop.permute.xlu1 %1516 }
 0x8a0   : > { %v1520_v17 = vsel %vm2713_vm3, %v1515_v55, %v1517_v11  ;;  %v1521_v39 = vsel %vm2714_vm13, %v1517_v11, %v1519_v3  ;;  %vm2717_vm3 = vcmask 1046528  }
 0x8a1   : > { %v1478_v21 = vpop.permute.xlu0 %1477  ;;  %v1545_v22 = vsel %vm2715_vm1, %v1543_v19, %v1521_v39  ;;  %v1544_v10 = vsel %vm2716_vm4, %v1542_v9, %v1520_v17  ;;  %vm2718_vm13 = vmmov %vm2717_vm3  ;;  %v1765_v39 = vld [vmem:[%s2691_s15] sm:$0x7]  ;;  %vm2721_vm4 = vcmask 785408  }
 0x8a2   : > { %v1481_v16 = vsel %vm583_vm5, %v1476_v57, %v1478_v21  ;;  %1586 = vmatprep.subr.mxu1 %v1545_v22 }
 0x8a3   : > { %1587 = vmatpush1.msra.mxu1 %v1544_v10  ;;  %v1480_v25 = vpop.permute.xlu1 %1479  ;;  %v1538_v27 = vsel %vm630_vm2, %v1536_v51, %v1481_v16 }
 0x8a4   : > { %v1482_v56 = vsel %vm583_vm5, %v1478_v21, %v1480_v25  ;;  %v1540_v31 = vsel %vm2718_vm13, %v1538_v27, %v1494_v6  ;;  %vm2723_vm13 = vcmask 777216  }
 0x8a5   : > { %v1439_v28 = vpop.permute.xlu0 %1438  ;;  %v1539_v29 = vsel %vm630_vm2, %v1537_v26, %v1482_v56 }
 0x8a6   : > { %v1541_v30 = vsel %vm2717_vm3, %v1539_v29, %v1495_v8  ;;  %vm2722_vm3 = vmmov %vm2721_vm4 }
 0x8a7   : > { %1588 = vmatprep.subr.mxu1 %v1541_v30  ;;  %v1441_v53 = vpop.permute.xlu1 %1440 }
 0x8a8   : > { %v1443_v32 = vsel %vm550_vm9, %v1439_v28, %v1441_v53  ;;  %1589 = vmatpush1.msra.mxu1 %v1540_v31 }
 0x8a9   : > { %v1437_v33 = vpop.permute.xlu0 %1436  ;;  %v1533_v34 = vsel %vm853_vm11, %v2494_v48, %v1443_v32 }
 0x8aa   : > { %v1442_v35 = vsel %vm550_vm9, %v1437_v33, %v1439_v28  ;;  %v1535_v36 = vsel %vm856_vm10, %v1533_v34, %v1456_v49 }
 0x8ab   : > { %v1532_v37 = vsel %vm853_vm11, %v2487_v23, %v1442_v35  ;;  %1590 = vmatprep.subr.mxu1 %v1535_v36 }
 0x8ac   : > { %v1534_v40 = vsel %vm856_vm10, %v1532_v37, %v1455_v24 }
 0x8ad   : > { %1591 = vmatpush1.msra.mxu1 %v1534_v40 }
 0x8ae   : > { %1934 = vmatmul.mubr.msk.f32.vlgmr.msra.gmra.mxu1 %vm880_vm15, %v1546_v38 }
 0x8b4   : > { %v1551_v0 = vpop.permute.xlu1 %1550 }
 0x96e   : > { %v1626_v41 = vpop.f32.mrf.mxu1 }
 0x96f   : > { %v1627_v48 = vadd.f32 %v1626_v41, %v1551_v0 }
 0x970   : > { %v1628_v18 = vpop.f32.mrf.mxu1 }
 0x971   : > { %v1631_v42 = vmax.f32 %v1627_v48, 0.0  ;;  %v1629_v43 = vadd.f32 %v1628_v18, %v1551_v0 }
 0x973   : > { %v1633_v44 = vmul.f32 %v1631_v42, %v2172_v7  ;;  %v1632_v45 = vmax.f32 %v1629_v43, 0.0 }
 0x975   : > { %v1635_v23 = vadd.f32 %v1633_v44, %v2178_v13  ;;  %v1634_v46 = vmul.f32 %v1632_v45, %v2175_v12 }
 0x977   : > { %v1636_v47 = vadd.f32 %v1634_v46, %v2183_v14  ;;  %1639 = vrot.lane.b32.xlu0 %v1635_v23, %s1972_s28 }
 0x979   : > { %1641 = vrot.lane.b32.xlu1 %v1636_v47, %s1972_s28 }
 0x9e9   : > { %v1640_v50 = vpop.permute.xlu0 %1639 }
 0x9ea   : > { %v2581_v52 = vsel %vm532_vm0, 0.0, %v1640_v50 }
 0x9eb   : > { %v1642_v54 = vpop.permute.xlu1 %1641  ;;  %1742 = vrot.lane.b32.xlu0 %v2581_v52, %s1974_s30  ;;  %v1716_v13 = vrot.slane %v2581_v52, 6  ;;  %v1703_v14 = vrot.slane %v2581_v52, 1  ;;  %v1664_v55 = vrot.slane %v2581_v52, 2  ;;  %v1677_v57 = vrot.slane %v2581_v52, 7 }
 0x9ec   : > { %v1648_v7 = vsel %vm532_vm0, %v1642_v54, 0.0  ;;  %v2588_v12 = vsel %vm532_vm0, %v1640_v50, %v1642_v54  ;;  %v1729_v58 = vrot.slane %v2581_v52, 3  ;;  %v1690_v59 = vrot.slane %v2581_v52, 4 }
 0x9ed   : > { %1746 = vrot.lane.b32.xlu1 %v1648_v7, %s1974_s30  ;;  %v1705_v60 = vrot.slane %v1648_v7, 1  ;;  %v1704_v61 = vrot.slane %v2588_v12, 1  ;;  %v1718_v62 = vrot.slane %v1648_v7, 6  ;;  %v1717_v63 = vrot.slane %v2588_v12, 6 }
 0x9ee   : > { %v1666_v1 = vrot.slane %v1648_v7, 2  ;;  %v1665_v2 = vrot.slane %v2588_v12, 2  ;;  %v1679_v4 = vrot.slane %v1648_v7, 7  ;;  %v1678_v5 = vrot.slane %v2588_v12, 7 }
 0x9ef   : > { %1744 = vrot.lane.b32.xlu0 %v2588_v12, %s1974_s30  ;;  %v1731_v3 = vrot.slane %v1648_v7, 3  ;;  %v1730_v6 = vrot.slane %v2588_v12, 3  ;;  %v1691_v8 = vrot.slane %v2588_v12, 4  ;;  %v1692_v9 = vrot.slane %v1648_v7, 4 }
 0x9f0   : > { %v1652_v11 = vrot.slane %v2588_v12, 5  ;;  %v1653_v15 = vrot.slane %v1648_v7, 5  ;;  %v1651_v17 = vrot.slane %v2581_v52, 5  ;;  %vm2719_vm0 = vcmask 769024  }
 0x9f1   : > { %1719 = vrot.lane.b32.xlu1 %v1716_v13, %s1973_s29  ;;  %vm2720_vm1 = vmmov %vm2719_vm0 }
 0x9f3   : > { %1706 = vrot.lane.b32.xlu0 %v1703_v14, %s1978_s19 }
 0x9f5   : > { %1667 = vrot.lane.b32.xlu1 %v1664_v55, %s1976_s17 }
 0x9f7   : > { %1680 = vrot.lane.b32.xlu0 %v1677_v57, %s1979_s20 }
 0x9f9   : > { %1732 = vrot.lane.b32.xlu1 %v1729_v58, %s1977_s18 }
 0x9fb   : > { %1693 = vrot.lane.b32.xlu0 %v1690_v59, %s1975_s0 }
 0x9fd   : > { %1710 = vrot.lane.b32.xlu1 %v1705_v60, %s1978_s19 }
 0x9ff   : > { %1708 = vrot.lane.b32.xlu0 %v1704_v61, %s1978_s19 }
 0xa01   : > { %1723 = vrot.lane.b32.xlu1 %v1718_v62, %s1973_s29 }
 0xa03   : > { %1721 = vrot.lane.b32.xlu0 %v1717_v63, %s1973_s29 }
 0xa05   : > { %1671 = vrot.lane.b32.xlu1 %v1666_v1, %s1976_s17 }
 0xa07   : > { %1669 = vrot.lane.b32.xlu0 %v1665_v2, %s1976_s17  ;;  %s2729_s17 = sshll.u32 %s2731_s22, 3 }
 0xa09   : > { %1684 = vrot.lane.b32.xlu1 %v1679_v4, %s1979_s20 }
 0xa0b   : > { %1682 = vrot.lane.b32.xlu0 %v1678_v5, %s1979_s20  ;;  %v1764_v5 = vld [vmem:[%s2690_s14] sm:$0x7]  ;;  %s521_s20 = scalar_lea.vmem %s2692_s16, %s2729_s17 }
 0xa0d   : > { %1736 = vrot.lane.b32.xlu1 %v1731_v3, %s1977_s18 }
 0xa0f   : > { %1734 = vrot.lane.b32.xlu0 %v1730_v6, %s1977_s18 }
 0xa11   : > { %1695 = vrot.lane.b32.xlu1 %v1691_v8, %s1975_s0 }
 0xa13   : > { %1697 = vrot.lane.b32.xlu0 %v1692_v9, %s1975_s0 }
 0xa15   : > { %1656 = vrot.lane.b32.xlu1 %v1652_v11, %s1982_s24 }
 0xa17   : > { %1658 = vrot.lane.b32.xlu0 %v1653_v15, %s1982_s24 }
 0xa19   : > { %1654 = vrot.lane.b32.xlu1 %v1651_v17, %s1982_s24 }
 0xa1b   : > { %1768 = vperm.xlu0 %1961, %v1765_v39  }
 0xa5d   : > { %v1743_v19 = vpop.permute.xlu0 %1742 }
 0xa5f   : > { %v1747_v20 = vpop.permute.xlu1 %1746 }
 0xa61   : > { %v1745_v21 = vpop.permute.xlu0 %1744 }
 0xa62   : > { %v1748_v22 = vsel %vm2719_vm0, %v1743_v19, %v1745_v21  ;;  %v1749_v10 = vsel %vm2720_vm1, %v1745_v21, %v1747_v20  ;;  %vm2724_vm0 = vmmov %vm2723_vm13  ;;  %vm2725_vm1 = vcmask 1044480  }
 0xa63   : > { %v1720_v24 = vpop.permute.xlu1 %1719  ;;  %1935 = vmatprep.subr.msk.mxu0 %vm853_vm11, %v1749_v10 }
 0xa64   : > { %1936 = vmatpush1.msk.msra.mxu0 %vm853_vm11, %v1748_v22 }
 0xa65   : > { %v1707_v16 = vpop.permute.xlu0 %1706 }
 0xa67   : > { %v1668_v49 = vpop.permute.xlu1 %1667 }
 0xa69   : > { %v1681_v51 = vpop.permute.xlu0 %1680 }
 0xa6b   : > { %v1733_v25 = vpop.permute.xlu1 %1732 }
 0xa6d   : > { %v1694_v26 = vpop.permute.xlu0 %1693 }
 0xa6f   : > { %v1711_v27 = vpop.permute.xlu1 %1710 }
 0xa71   : > { %v1709_v56 = vpop.permute.xlu0 %1708 }
 0xa72   : > { %v1712_v36 = vsel %vm594_vm6, %v1707_v16, %v1709_v56  ;;  %v1713_v37 = vsel %vm594_vm6, %v1709_v56, %v1711_v27  ;;  %vm2727_vm6 = vcmask 1046528  }
 0xa73   : > { %v1724_v28 = vpop.permute.xlu1 %1723 }
 0xa75   : > { %v1722_v29 = vpop.permute.xlu0 %1721 }
 0xa76   : > { %v1725_v33 = vsel %vm2721_vm4, %v1720_v24, %v1722_v29  ;;  %v1726_v34 = vsel %vm2722_vm3, %v1722_v29, %v1724_v28  ;;  %vm2726_vm4 = vmmov %vm2725_vm1 }
 0xa77   : > { %v1672_v30 = vpop.permute.xlu1 %1671  ;;  %v1760_v38 = vsel %vm867_vm12, %v1712_v36, %v1725_v33  ;;  %v1761_v18 = vsel %vm867_vm12, %v1713_v37, %v1726_v34 }
 0xa79   : > { %v1670_v53 = vpop.permute.xlu0 %1669 }
 0xa7a   : > { %v1673_v23 = vsel %vm561_vm7, %v1668_v49, %v1670_v53  ;;  %v1674_v47 = vsel %vm561_vm7, %v1670_v53, %v1672_v30 }
 0xa7b   : > { %v1685_v31 = vpop.permute.xlu1 %1684 }
 0xa7d   : > { %v1683_v32 = vpop.permute.xlu0 %1682 }
 0xa7e   : > { %v1686_v0 = vsel %vm572_vm8, %v1681_v51, %v1683_v32  ;;  %v1687_v42 = vsel %vm572_vm8, %v1683_v32, %v1685_v31  ;;  %vm2728_vm8 = vmmov %vm2727_vm6 }
 0xa7f   : > { %v1737_v35 = vpop.permute.xlu1 %1736  ;;  %v1754_v50 = vsel %vm859_vm14, %v1673_v23, %v1686_v0  ;;  %v1755_v7 = vsel %vm859_vm14, %v1674_v47, %v1687_v42 }
 0xa81   : > { %v1735_v40 = vpop.permute.xlu0 %1734 }
 0xa82   : > { %v1738_v41 = vsel %vm2723_vm13, %v1733_v25, %v1735_v40  ;;  %v1739_v48 = vsel %vm2724_vm0, %v1735_v40, %v1737_v35 }
 0xa83   : > { %v1696_v43 = vpop.permute.xlu1 %1695  ;;  %v1763_v44 = vsel %vm2725_vm1, %v1761_v18, %v1739_v48  ;;  %v1762_v45 = vsel %vm2726_vm4, %v1760_v38, %v1738_v41 }
 0xa84   : > { %v1699_v46 = vsel %vm583_vm5, %v1694_v26, %v1696_v43  ;;  %1804 = vmatprep.subr.mxu0 %v1763_v44 }
 0xa85   : > { %1805 = vmatpush1.msra.mxu0 %v1762_v45  ;;  %v1698_v54 = vpop.permute.xlu0 %1697  ;;  %v1756_v13 = vsel %vm630_vm2, %v1754_v50, %v1699_v46 }
 0xa86   : > { %v1700_v14 = vsel %vm583_vm5, %v1696_v43, %v1698_v54  ;;  %v1758_v60 = vsel %vm2728_vm8, %v1756_v13, %v1712_v36 }
 0xa87   : > { %v1657_v55 = vpop.permute.xlu1 %1656  ;;  %v1757_v57 = vsel %vm630_vm2, %v1755_v7, %v1700_v14 }
 0xa88   : > { %v1759_v58 = vsel %vm2727_vm6, %v1757_v57, %v1713_v37 }
 0xa89   : > { %1806 = vmatprep.subr.mxu0 %v1759_v58  ;;  %v1659_v59 = vpop.permute.xlu0 %1658 }
 0xa8a   : > { %v1661_v61 = vsel %vm550_vm9, %v1657_v55, %v1659_v59  ;;  %1807 = vmatpush1.msra.mxu0 %v1758_v60 }
 0xa8b   : > { %v1655_v62 = vpop.permute.xlu1 %1654  ;;  %v1751_v63 = vsel %vm853_vm11, %v2588_v12, %v1661_v61 }
 0xa8c   : > { %v1660_v1 = vsel %vm550_vm9, %v1655_v62, %v1657_v55  ;;  %v1753_v2 = vsel %vm856_vm10, %v1751_v63, %v1674_v47 }
 0xa8d   : > { %v1750_v4 = vsel %vm853_vm11, %v2581_v52, %v1660_v1  ;;  %1808 = vmatprep.subr.mxu0 %v1753_v2 }
 0xa8e   : > { %v1752_v3 = vsel %vm856_vm10, %v1750_v4, %v1673_v23 }
 0xa8f   : > { %1809 = vmatpush1.msra.mxu0 %v1752_v3 }
 0xa90   : > { %1937 = vmatmul.mubr.msk.f32.vlgmr.msra.gmra.mxu0 %vm880_vm15, %v1764_v5 }
 0xa96   : > { %v1769_v6 = vpop.permute.xlu0 %1768 }
 0xb50   : > { %v1844_v12 = vpop.f32.mrf.mxu0 }
 0xb51   : > { %v1845_v8 = vadd.f32 %v1844_v12, %v1769_v6 }
 0xb52   : > { %v1846_v9 = vpop.f32.mrf.mxu0 }
 0xb53   : > { %v1847_v11 = vadd.f32 %v1846_v9, %v1769_v6  ;;  %v1849_v15 = vmax.f32 %v1845_v8, 0.0 }
 0xb55   : > { %v1850_v17 = vmax.f32 %v1847_v11, 0.0 }
 0xb57   : > { %v1853_v52 = vcombine.low %v1849_v15, %v1850_v17 }
 0xb59   : > { %1855 = vst [vmem:[%s521_s20] sm:$0x77] %v1853_v52 }
 0xb5a PF: > { %s26_s21 = sadd.s32 1, %s1970_s21  }
 0xb5b   : > { %p23_p4 = scmp.ge.s32.totalorder %s26_s21, 4  }
 0xb5d   :  { %25 = sbr.rel (!%p23_p4) target bundleno = 2 (0x2), region = 114 }

</bundles_post_ra>
